<compile_context>
chip_gen: v5e
topology: v5e:2x2
jax: 0.10.0
libtpu: 0.0.40
codegen_flags: <defaults>
</compile_context>

<pallas_src>
import functools

import jax
import jax.numpy as jnp
from jax import lax
from jax.experimental import pallas as pl
from jax.experimental.pallas import tpu as pltpu

# ----- small synthetic BERT config -----
VOCAB = 100
MAX_POS = 64
TYPE_VOCAB = 2
HIDDEN = 32
N_HEADS = 2
HEAD_DIM = HIDDEN // N_HEADS
FFN = 64
N_LAYERS = 2
BATCH = 2
SEQ = 8
LN_EPS = 1e-12


def _full_spec(shape):
    # whole-array block (shapes are tiny; last two dims == full dims, so legal)
    return pl.BlockSpec(shape, lambda: (0,) * len(shape))


# ---------------- in-kernel helpers (pure vreg math, no launches) ----------------
def _layernorm(h, g, b):
    mean = jnp.mean(h, axis=-1, keepdims=True)
    c = h - mean
    var = jnp.mean(c * c, axis=-1, keepdims=True)
    return c * lax.rsqrt(var + LN_EPS) * g + b


def _gelu_tanh(y):
    # TODO(synk): HF BERT uses exact erf-GELU; tanh approximation used for robust TPU lowering.
    return 0.5 * y * (1.0 + jnp.tanh(0.7978845608028654 * (y + 0.044715 * y * y * y)))


def _bf16_dot(a, b):
    # bf16 operands for full MXU rate, f32 accumulation.
    return jnp.dot(a.astype(jnp.bfloat16), b.astype(jnp.bfloat16),
                   preferred_element_type=jnp.float32)


# ---------------- single fused encoder kernel ----------------
def _encoder_kernel(emb_ref, mask_ref,
                    emb_ln_g_ref, emb_ln_b_ref,
                    wqkv_ref, bqkv_ref, wo_ref, bo_ref, ln1_g_ref, ln1_b_ref,
                    w1_ref, b1_ref, w2_ref, b2_ref, ln2_g_ref, ln2_b_ref,
                    pool_w_ref, pool_b_ref,
                    o_ref, ctx_sc):
    # embedding LayerNorm (no residual, no zeros_like)
    x = _layernorm(emb_ref[...], emb_ln_g_ref[...], emb_ln_b_ref[...])      # (B*S, H)

    # additive attention bias: 0 for real tokens, -1e9 for padding (hoisted out of the layer loop)
    bias = (1.0 - mask_ref[...]) * jnp.float32(-1e9)                        # (B, S)
    scale = jnp.float32(1.0 / (HEAD_DIM ** 0.5))

    for l in range(N_LAYERS):                     # static unroll; all data stays in VMEM/vregs
        # ---- fused QKV projection: one (B*S, 3H) matmul ----
        qkv = _bf16_dot(x, wqkv_ref[l]) + bqkv_ref[l]                       # (B*S, 3H)

        # ---- self-attention: all (batch, head) pairs inside one kernel body ----
        for b in range(BATCH):
            r0 = b * SEQ
            bias_b = bias[b:b + 1, :]                                       # (1, S)
            for h in range(N_HEADS):
                c0 = h * HEAD_DIM
                q = qkv[r0:r0 + SEQ, c0:c0 + HEAD_DIM]                      # (S, dh)
                k = qkv[r0:r0 + SEQ, HIDDEN + c0:HIDDEN + c0 + HEAD_DIM]    # (S, dh)
                v = qkv[r0:r0 + SEQ, 2 * HIDDEN + c0:2 * HIDDEN + c0 + HEAD_DIM]
                # contract head_dim of q and k directly (no explicit k.T relayout)
                s = lax.dot_general(q, k, (((1,), (1,)), ((), ())),
                                    preferred_element_type=jnp.float32)     # (S, S)
                s = s * scale + bias_b
                s = s - jnp.max(s, axis=-1, keepdims=True)
                p = jnp.exp(s)
                p = p / jnp.sum(p, axis=-1, keepdims=True)
                out = jnp.dot(p, v, preferred_element_type=jnp.float32)     # (S, dh)
                ctx_sc[pl.ds(r0, SEQ), pl.ds(c0, HEAD_DIM)] = out

        # ---- output projection + residual + LayerNorm (fused epilogue) ----
        attn_out = _bf16_dot(ctx_sc[...], wo_ref[l]) + bo_ref[l]            # (B*S, H)
        x = _layernorm(attn_out + x, ln1_g_ref[l], ln1_b_ref[l])

        # ---- FFN: GELU(x@w1+b1)@w2+b2 + residual + LayerNorm, all in one body ----
        hmid = _gelu_tanh(_bf16_dot(x, w1_ref[l]) + b1_ref[l])              # (B*S, FFN)
        ffn = _bf16_dot(hmid, w2_ref[l]) + b2_ref[l]                        # (B*S, H)
        x = _layernorm(ffn + x, ln2_g_ref[l], ln2_b_ref[l])

    # ---- pooler: dense + tanh on the [CLS] row of each example ----
    pw = pool_w_ref[...]
    pb = pool_b_ref[...]
    for b in range(BATCH):
        cls = x[b * SEQ:b * SEQ + 1, :]                                     # (1, H)
        o_ref[pl.ds(b, 1), :] = jnp.tanh(_bf16_dot(cls, pw) + pb)


# ---------------- parameter init (deterministic, synthetic; QKV pre-fused, layers stacked) ----------------
def init_params(key):
    keys = iter(jax.random.split(key, 128))

    def nrm(shape, scale=0.02):
        return (scale * jax.random.normal(next(keys), shape)).astype(jnp.float32)

    def stack(fn):
        return jnp.stack([fn() for _ in range(N_LAYERS)], axis=0)

    params = {
        "word_emb": nrm((VOCAB, HIDDEN)),
        "pos_emb": nrm((MAX_POS, HIDDEN)),
        "type_emb": nrm((TYPE_VOCAB, HIDDEN)),
        "emb_ln_g": jnp.ones((1, HIDDEN), jnp.float32),
        "emb_ln_b": jnp.zeros((1, HIDDEN), jnp.float32),
        # fused QKV weight = concat(wq | wk | wv) along the output dim
        "wqkv": stack(lambda: jnp.concatenate(
            [nrm((HIDDEN, HIDDEN)), nrm((HIDDEN, HIDDEN)), nrm((HIDDEN, HIDDEN))], axis=1)),
        "bqkv": jnp.zeros((N_LAYERS, 1, 3 * HIDDEN), jnp.float32),
        "wo": stack(lambda: nrm((HIDDEN, HIDDEN))),
        "bo": jnp.zeros((N_LAYERS, 1, HIDDEN), jnp.float32),
        "ln1_g": jnp.ones((N_LAYERS, 1, HIDDEN), jnp.float32),
        "ln1_b": jnp.zeros((N_LAYERS, 1, HIDDEN), jnp.float32),
        "w1": stack(lambda: nrm((HIDDEN, FFN))),
        "b1": jnp.zeros((N_LAYERS, 1, FFN), jnp.float32),
        "w2": stack(lambda: nrm((FFN, HIDDEN))),
        "b2": jnp.zeros((N_LAYERS, 1, HIDDEN), jnp.float32),
        "ln2_g": jnp.ones((N_LAYERS, 1, HIDDEN), jnp.float32),
        "ln2_b": jnp.zeros((N_LAYERS, 1, HIDDEN), jnp.float32),
        "pool_w": nrm((HIDDEN, HIDDEN)),
        "pool_b": jnp.zeros((1, HIDDEN), jnp.float32),
    }
    return params


# ---------------- full forward (BERT encoder + pooler), one pallas_call ----------------
@functools.partial(jax.jit, static_argnames=())
def bert_forward(params, input_ids, token_type_ids, attention_mask):
    B, S = input_ids.shape
    # embedding gather (plain-JAX glue)
    emb = (params["word_emb"][input_ids]
           + params["pos_emb"][jnp.arange(S)][None, :, :]
           + params["type_emb"][token_type_ids])
    emb = emb.reshape(B * S, HIDDEN).astype(jnp.float32)

    kernel_inputs = [
        emb, attention_mask.astype(jnp.float32),
        params["emb_ln_g"], params["emb_ln_b"],
        params["wqkv"], params["bqkv"], params["wo"], params["bo"],
        params["ln1_g"], params["ln1_b"],
        params["w1"], params["b1"], params["w2"], params["b2"],
        params["ln2_g"], params["ln2_b"],
        params["pool_w"], params["pool_b"],
    ]
    in_specs = [_full_spec(tuple(a.shape)) for a in kernel_inputs]

    pooled = pl.pallas_call(
        _encoder_kernel,
        out_shape=jax.ShapeDtypeStruct((B, HIDDEN), jnp.float32),
        in_specs=in_specs,
        out_specs=_full_spec((B, HIDDEN)),
        scratch_shapes=[pltpu.VMEM((B * S, HIDDEN), jnp.float32)],   # merged attention context
    )(*kernel_inputs)
    return pooled                                                    # == pooler_output


if __name__ == "__main__":
    key = jax.random.PRNGKey(0)
    pkey, ikey = jax.random.split(key)
    params = init_params(pkey)

    # synthetic "tokenized batch" (stands in for tokenizer output)
    input_ids = jax.random.randint(ikey, (BATCH, SEQ), 0, VOCAB, dtype=jnp.int32)
    token_type_ids = jnp.zeros((BATCH, SEQ), jnp.int32)
    attention_mask = jnp.ones((BATCH, SEQ), jnp.int32).at[1, 6:].set(0)  # mimic padding

    pooled = bert_forward(params, input_ids, token_type_ids, attention_mask)
    jax.block_until_ready(pooled)
    assert pooled.shape == (BATCH, HIDDEN) and pooled.dtype == jnp.float32
    print("KERNEL_OK")
</pallas_src>

<mosaic_0001>
module attributes {stable_mosaic.version = 11 : i64} {
  func.func @_encoder_kernel(%arg0: memref<16x32xf32, #tpu.memory_space<vmem>>, %arg1: memref<2x8xf32, #tpu.memory_space<vmem>>, %arg2: memref<1x32xf32, #tpu.memory_space<vmem>>, %arg3: memref<1x32xf32, #tpu.memory_space<vmem>>, %arg4: memref<2x32x96xf32, #tpu.memory_space<vmem>>, %arg5: memref<2x1x96xf32, #tpu.memory_space<vmem>>, %arg6: memref<2x32x32xf32, #tpu.memory_space<vmem>>, %arg7: memref<2x1x32xf32, #tpu.memory_space<vmem>>, %arg8: memref<2x1x32xf32, #tpu.memory_space<vmem>>, %arg9: memref<2x1x32xf32, #tpu.memory_space<vmem>>, %arg10: memref<2x32x64xf32, #tpu.memory_space<vmem>>, %arg11: memref<2x1x64xf32, #tpu.memory_space<vmem>>, %arg12: memref<2x64x32xf32, #tpu.memory_space<vmem>>, %arg13: memref<2x1x32xf32, #tpu.memory_space<vmem>>, %arg14: memref<2x1x32xf32, #tpu.memory_space<vmem>>, %arg15: memref<2x1x32xf32, #tpu.memory_space<vmem>>, %arg16: memref<32x32xf32, #tpu.memory_space<vmem>>, %arg17: memref<1x32xf32, #tpu.memory_space<vmem>>, %arg18: memref<2x32xf32, #tpu.memory_space<vmem>>, %arg19: memref<16x32xf32, #tpu.memory_space<vmem>>) attributes {dimension_semantics = [], scalar_prefetch = 0 : i64, scratch_operands = 1 : i64, tpu.core_type = #tpu.core_type<tc>} {
    %c0 = arith.constant 0 : index
    %c0_0 = arith.constant 0 : index
    %0 = vector.load %arg0[%c0, %c0_0] : memref<16x32xf32, #tpu.memory_space<vmem>>, vector<16x32xf32>
    %c0_1 = arith.constant 0 : index
    %c0_2 = arith.constant 0 : index
    %1 = vector.load %arg2[%c0_1, %c0_2] : memref<1x32xf32, #tpu.memory_space<vmem>>, vector<1x32xf32>
    %c0_3 = arith.constant 0 : index
    %c0_4 = arith.constant 0 : index
    %2 = vector.load %arg3[%c0_3, %c0_4] : memref<1x32xf32, #tpu.memory_space<vmem>>, vector<1x32xf32>
    %cst = arith.constant dense<0.000000e+00> : vector<16xf32>
    %3 = vector.multi_reduction <add>, %0, %cst [1] : vector<16x32xf32> to vector<16xf32>
    %4 = vector.shape_cast %3 : vector<16xf32> to vector<16x1xf32>
    %cst_5 = arith.constant 3.200000e+01 : f32
    %5 = vector.broadcast %cst_5 : f32 to vector<16x1xf32>
    %6 = arith.divf %4, %5 : vector<16x1xf32>
    %7 = vector.broadcast %6 : vector<16x1xf32> to vector<16x32xf32>
    %8 = arith.subf %0, %7 : vector<16x32xf32>
    %9 = arith.mulf %8, %8 : vector<16x32xf32>
    %cst_6 = arith.constant dense<0.000000e+00> : vector<16xf32>
    %10 = vector.multi_reduction <add>, %9, %cst_6 [1] : vector<16x32xf32> to vector<16xf32>
    %11 = vector.shape_cast %10 : vector<16xf32> to vector<16x1xf32>
    %cst_7 = arith.constant 3.200000e+01 : f32
    %12 = vector.broadcast %cst_7 : f32 to vector<16x1xf32>
    %13 = arith.divf %11, %12 : vector<16x1xf32>
    %cst_8 = arith.constant 9.99999996E-13 : f32
    %14 = vector.broadcast %cst_8 : f32 to vector<16x1xf32>
    %15 = arith.addf %13, %14 : vector<16x1xf32>
    %16 = math.rsqrt %15 : vector<16x1xf32>
    %17 = vector.broadcast %16 : vector<16x1xf32> to vector<16x32xf32>
    %18 = arith.mulf %8, %17 : vector<16x32xf32>
    %19 = vector.broadcast %1 : vector<1x32xf32> to vector<16x32xf32>
    %20 = arith.mulf %18, %19 : vector<16x32xf32>
    %21 = vector.broadcast %2 : vector<1x32xf32> to vector<16x32xf32>
    %22 = arith.addf %20, %21 : vector<16x32xf32>
    %c0_9 = arith.constant 0 : index
    %c0_10 = arith.constant 0 : index
    %23 = vector.load %arg1[%c0_9, %c0_10] : memref<2x8xf32, #tpu.memory_space<vmem>>, vector<2x8xf32>
    %cst_11 = arith.constant 1.000000e+00 : f32
    %24 = vector.broadcast %cst_11 : f32 to vector<2x8xf32>
    %25 = arith.subf %24, %23 : vector<2x8xf32>
    %cst_12 = arith.constant -1.000000e+09 : f32
    %26 = vector.broadcast %cst_12 : f32 to vector<2x8xf32>
    %27 = arith.mulf %25, %26 : vector<2x8xf32>
    %c0_13 = arith.constant 0 : index
    %c0_14 = arith.constant 0 : index
    %c0_15 = arith.constant 0 : index
    %28 = vector.load %arg4[%c0_13, %c0_14, %c0_15] : memref<2x32x96xf32, #tpu.memory_space<vmem>>, vector<1x32x96xf32>
    %29 = vector.shape_cast %28 : vector<1x32x96xf32> to vector<32x96xf32>
    %30 = arith.truncf %22 : vector<16x32xf32> to vector<16x32xbf16>
    %31 = arith.truncf %29 : vector<32x96xf32> to vector<32x96xbf16>
    %cst_16 = arith.constant dense<0.000000e+00> : vector<16x96xf32>
    %32 = tpu.matmul %30, %31, %cst_16 {dimension_numbers = #tpu.dot_dimension_numbers<[1], [0], [0], [1], [0, 0, 1, 1], [], []>} : vector<16x32xbf16>, vector<32x96xbf16>, vector<16x96xf32> -> vector<16x96xf32>
    %c0_17 = arith.constant 0 : index
    %c0_18 = arith.constant 0 : index
    %c0_19 = arith.constant 0 : index
    %33 = vector.load %arg5[%c0_17, %c0_18, %c0_19] : memref<2x1x96xf32, #tpu.memory_space<vmem>>, vector<1x1x96xf32>
    %34 = vector.shape_cast %33 : vector<1x1x96xf32> to vector<1x96xf32>
    %35 = vector.broadcast %34 : vector<1x96xf32> to vector<16x96xf32>
    %36 = arith.addf %32, %35 : vector<16x96xf32>
    %37 = vector.extract_strided_slice %27 {offsets = [0, 0], sizes = [1, 8], strides = [1, 1]} : vector<2x8xf32> to vector<1x8xf32>
    %38 = vector.extract_strided_slice %36 {offsets = [0, 0], sizes = [8, 16], strides = [1, 1]} : vector<16x96xf32> to vector<8x16xf32>
    %39 = vector.extract_strided_slice %36 {offsets = [0, 32], sizes = [8, 16], strides = [1, 1]} : vector<16x96xf32> to vector<8x16xf32>
    %40 = vector.extract_strided_slice %36 {offsets = [0, 64], sizes = [8, 16], strides = [1, 1]} : vector<16x96xf32> to vector<8x16xf32>
    %cst_20 = arith.constant dense<0.000000e+00> : vector<8x8xf32>
    %41 = tpu.matmul %38, %39, %cst_20 {dimension_numbers = #tpu.dot_dimension_numbers<[1], [1], [0], [0], [0, 0, 1, 0], [], []>} : vector<8x16xf32>, vector<8x16xf32>, vector<8x8xf32> -> vector<8x8xf32>
    %cst_21 = arith.constant 2.500000e-01 : f32
    %42 = vector.broadcast %cst_21 : f32 to vector<8x8xf32>
    %43 = arith.mulf %41, %42 : vector<8x8xf32>
    %44 = vector.broadcast %37 : vector<1x8xf32> to vector<8x8xf32>
    %45 = arith.addf %43, %44 : vector<8x8xf32>
    %cst_22 = arith.constant dense<0xFF800000> : vector<8xf32>
    %46 = vector.multi_reduction <maximumf>, %45, %cst_22 [1] : vector<8x8xf32> to vector<8xf32>
    %47 = vector.shape_cast %46 : vector<8xf32> to vector<8x1xf32>
    %48 = vector.broadcast %47 : vector<8x1xf32> to vector<8x8xf32>
    %49 = arith.subf %45, %48 : vector<8x8xf32>
    %50 = math.exp %49 : vector<8x8xf32>
    %cst_23 = arith.constant dense<0.000000e+00> : vector<8xf32>
    %51 = vector.multi_reduction <add>, %50, %cst_23 [1] : vector<8x8xf32> to vector<8xf32>
    %52 = vector.shape_cast %51 : vector<8xf32> to vector<8x1xf32>
    %53 = vector.broadcast %52 : vector<8x1xf32> to vector<8x8xf32>
    %54 = arith.divf %50, %53 : vector<8x8xf32>
    %cst_24 = arith.constant dense<0.000000e+00> : vector<8x16xf32>
    %55 = tpu.matmul %54, %40, %cst_24 {dimension_numbers = #tpu.dot_dimension_numbers<[1], [0], [0], [1], [0, 0, 1, 1], [], []>} : vector<8x8xf32>, vector<8x16xf32>, vector<8x16xf32> -> vector<8x16xf32>
    %c0_25 = arith.constant 0 : index
    %c0_26 = arith.constant 0 : index
    %56 = vector.load %arg19[%c0_25, %c0_26] : memref<16x32xf32, #tpu.memory_space<vmem>>, vector<8x16xf32>
    tpu.vector_store %arg19[%c0_25, %c0_26], %55 {strides = array<i32>} : memref<16x32xf32, #tpu.memory_space<vmem>>, vector<8x16xf32>,
    %57 = vector.extract_strided_slice %36 {offsets = [0, 16], sizes = [8, 16], strides = [1, 1]} : vector<16x96xf32> to vector<8x16xf32>
    %58 = vector.extract_strided_slice %36 {offsets = [0, 48], sizes = [8, 16], strides = [1, 1]} : vector<16x96xf32> to vector<8x16xf32>
    %59 = vector.extract_strided_slice %36 {offsets = [0, 80], sizes = [8, 16], strides = [1, 1]} : vector<16x96xf32> to vector<8x16xf32>
    %cst_27 = arith.constant dense<0.000000e+00> : vector<8x8xf32>
    %60 = tpu.matmul %57, %58, %cst_27 {dimension_numbers = #tpu.dot_dimension_numbers<[1], [1], [0], [0], [0, 0, 1, 0], [], []>} : vector<8x16xf32>, vector<8x16xf32>, vector<8x8xf32> -> vector<8x8xf32>
    %cst_28 = arith.constant 2.500000e-01 : f32
    %61 = vector.broadcast %cst_28 : f32 to vector<8x8xf32>
    %62 = arith.mulf %60, %61 : vector<8x8xf32>
    %63 = vector.broadcast %37 : vector<1x8xf32> to vector<8x8xf32>
    %64 = arith.addf %62, %63 : vector<8x8xf32>
    %cst_29 = arith.constant dense<0xFF800000> : vector<8xf32>
    %65 = vector.multi_reduction <maximumf>, %64, %cst_29 [1] : vector<8x8xf32> to vector<8xf32>
    %66 = vector.shape_cast %65 : vector<8xf32> to vector<8x1xf32>
    %67 = vector.broadcast %66 : vector<8x1xf32> to vector<8x8xf32>
    %68 = arith.subf %64, %67 : vector<8x8xf32>
    %69 = math.exp %68 : vector<8x8xf32>
    %cst_30 = arith.constant dense<0.000000e+00> : vector<8xf32>
    %70 = vector.multi_reduction <add>, %69, %cst_30 [1] : vector<8x8xf32> to vector<8xf32>
    %71 = vector.shape_cast %70 : vector<8xf32> to vector<8x1xf32>
    %72 = vector.broadcast %71 : vector<8x1xf32> to vector<8x8xf32>
    %73 = arith.divf %69, %72 : vector<8x8xf32>
    %cst_31 = arith.constant dense<0.000000e+00> : vector<8x16xf32>
    %74 = tpu.matmul %73, %59, %cst_31 {dimension_numbers = #tpu.dot_dimension_numbers<[1], [0], [0], [1], [0, 0, 1, 1], [], []>} : vector<8x8xf32>, vector<8x16xf32>, vector<8x16xf32> -> vector<8x16xf32>
    %c0_32 = arith.constant 0 : index
    %c16 = arith.constant 16 : index
    %75 = vector.load %arg19[%c0_32, %c16] : memref<16x32xf32, #tpu.memory_space<vmem>>, vector<8x16xf32>
    tpu.vector_store %arg19[%c0_32, %c16], %74 {strides = array<i32>} : memref<16x32xf32, #tpu.memory_space<vmem>>, vector<8x16xf32>,
    %76 = vector.extract_strided_slice %27 {offsets = [1, 0], sizes = [1, 8], strides = [1, 1]} : vector<2x8xf32> to vector<1x8xf32>
    %77 = vector.extract_strided_slice %36 {offsets = [8, 0], sizes = [8, 16], strides = [1, 1]} : vector<16x96xf32> to vector<8x16xf32>
    %78 = vector.extract_strided_slice %36 {offsets = [8, 32], sizes = [8, 16], strides = [1, 1]} : vector<16x96xf32> to vector<8x16xf32>
    %79 = vector.extract_strided_slice %36 {offsets = [8, 64], sizes = [8, 16], strides = [1, 1]} : vector<16x96xf32> to vector<8x16xf32>
    %cst_33 = arith.constant dense<0.000000e+00> : vector<8x8xf32>
    %80 = tpu.matmul %77, %78, %cst_33 {dimension_numbers = #tpu.dot_dimension_numbers<[1], [1], [0], [0], [0, 0, 1, 0], [], []>} : vector<8x16xf32>, vector<8x16xf32>, vector<8x8xf32> -> vector<8x8xf32>
    %cst_34 = arith.constant 2.500000e-01 : f32
    %81 = vector.broadcast %cst_34 : f32 to vector<8x8xf32>
    %82 = arith.mulf %80, %81 : vector<8x8xf32>
    %83 = vector.broadcast %76 : vector<1x8xf32> to vector<8x8xf32>
    %84 = arith.addf %82, %83 : vector<8x8xf32>
    %cst_35 = arith.constant dense<0xFF800000> : vector<8xf32>
    %85 = vector.multi_reduction <maximumf>, %84, %cst_35 [1] : vector<8x8xf32> to vector<8xf32>
    %86 = vector.shape_cast %85 : vector<8xf32> to vector<8x1xf32>
    %87 = vector.broadcast %86 : vector<8x1xf32> to vector<8x8xf32>
    %88 = arith.subf %84, %87 : vector<8x8xf32>
    %89 = math.exp %88 : vector<8x8xf32>
    %cst_36 = arith.constant dense<0.000000e+00> : vector<8xf32>
    %90 = vector.multi_reduction <add>, %89, %cst_36 [1] : vector<8x8xf32> to vector<8xf32>
    %91 = vector.shape_cast %90 : vector<8xf32> to vector<8x1xf32>
    %92 = vector.broadcast %91 : vector<8x1xf32> to vector<8x8xf32>
    %93 = arith.divf %89, %92 : vector<8x8xf32>
    %cst_37 = arith.constant dense<0.000000e+00> : vector<8x16xf32>
    %94 = tpu.matmul %93, %79, %cst_37 {dimension_numbers = #tpu.dot_dimension_numbers<[1], [0], [0], [1], [0, 0, 1, 1], [], []>} : vector<8x8xf32>, vector<8x16xf32>, vector<8x16xf32> -> vector<8x16xf32>
    %c8 = arith.constant 8 : index
    %c0_38 = arith.constant 0 : index
    %95 = vector.load %arg19[%c8, %c0_38] : memref<16x32xf32, #tpu.memory_space<vmem>>, vector<8x16xf32>
    tpu.vector_store %arg19[%c8, %c0_38], %94 {strides = array<i32>} : memref<16x32xf32, #tpu.memory_space<vmem>>, vector<8x16xf32>,
    %96 = vector.extract_strided_slice %36 {offsets = [8, 16], sizes = [8, 16], strides = [1, 1]} : vector<16x96xf32> to vector<8x16xf32>
    %97 = vector.extract_strided_slice %36 {offsets = [8, 48], sizes = [8, 16], strides = [1, 1]} : vector<16x96xf32> to vector<8x16xf32>
    %98 = vector.extract_strided_slice %36 {offsets = [8, 80], sizes = [8, 16], strides = [1, 1]} : vector<16x96xf32> to vector<8x16xf32>
    %cst_39 = arith.constant dense<0.000000e+00> : vector<8x8xf32>
    %99 = tpu.matmul %96, %97, %cst_39 {dimension_numbers = #tpu.dot_dimension_numbers<[1], [1], [0], [0], [0, 0, 1, 0], [], []>} : vector<8x16xf32>, vector<8x16xf32>, vector<8x8xf32> -> vector<8x8xf32>
    %cst_40 = arith.constant 2.500000e-01 : f32
    %100 = vector.broadcast %cst_40 : f32 to vector<8x8xf32>
    %101 = arith.mulf %99, %100 : vector<8x8xf32>
    %102 = vector.broadcast %76 : vector<1x8xf32> to vector<8x8xf32>
    %103 = arith.addf %101, %102 : vector<8x8xf32>
    %cst_41 = arith.constant dense<0xFF800000> : vector<8xf32>
    %104 = vector.multi_reduction <maximumf>, %103, %cst_41 [1] : vector<8x8xf32> to vector<8xf32>
    %105 = vector.shape_cast %104 : vector<8xf32> to vector<8x1xf32>
    %106 = vector.broadcast %105 : vector<8x1xf32> to vector<8x8xf32>
    %107 = arith.subf %103, %106 : vector<8x8xf32>
    %108 = math.exp %107 : vector<8x8xf32>
    %cst_42 = arith.constant dense<0.000000e+00> : vector<8xf32>
    %109 = vector.multi_reduction <add>, %108, %cst_42 [1] : vector<8x8xf32> to vector<8xf32>
    %110 = vector.shape_cast %109 : vector<8xf32> to vector<8x1xf32>
    %111 = vector.broadcast %110 : vector<8x1xf32> to vector<8x8xf32>
    %112 = arith.divf %108, %111 : vector<8x8xf32>
    %cst_43 = arith.constant dense<0.000000e+00> : vector<8x16xf32>
    %113 = tpu.matmul %112, %98, %cst_43 {dimension_numbers = #tpu.dot_dimension_numbers<[1], [0], [0], [1], [0, 0, 1, 1], [], []>} : vector<8x8xf32>, vector<8x16xf32>, vector<8x16xf32> -> vector<8x16xf32>
    %c8_44 = arith.constant 8 : index
    %c16_45 = arith.constant 16 : index
    %114 = vector.load %arg19[%c8_44, %c16_45] : memref<16x32xf32, #tpu.memory_space<vmem>>, vector<8x16xf32>
    tpu.vector_store %arg19[%c8_44, %c16_45], %113 {strides = array<i32>} : memref<16x32xf32, #tpu.memory_space<vmem>>, vector<8x16xf32>,
    %c0_46 = arith.constant 0 : index
    %c0_47 = arith.constant 0 : index
    %115 = vector.load %arg19[%c0_46, %c0_47] : memref<16x32xf32, #tpu.memory_space<vmem>>, vector<16x32xf32>
    %c0_48 = arith.constant 0 : index
    %c0_49 = arith.constant 0 : index
    %c0_50 = arith.constant 0 : index
    %116 = vector.load %arg6[%c0_48, %c0_49, %c0_50] : memref<2x32x32xf32, #tpu.memory_space<vmem>>, vector<1x32x32xf32>
    %117 = vector.shape_cast %116 : vector<1x32x32xf32> to vector<32x32xf32>
    %118 = arith.truncf %115 : vector<16x32xf32> to vector<16x32xbf16>
    %119 = arith.truncf %117 : vector<32x32xf32> to vector<32x32xbf16>
    %cst_51 = arith.constant dense<0.000000e+00> : vector<16x32xf32>
    %120 = tpu.matmul %118, %119, %cst_51 {dimension_numbers = #tpu.dot_dimension_numbers<[1], [0], [0], [1], [0, 0, 1, 1], [], []>} : vector<16x32xbf16>, vector<32x32xbf16>, vector<16x32xf32> -> vector<16x32xf32>
    %c0_52 = arith.constant 0 : index
    %c0_53 = arith.constant 0 : index
    %c0_54 = arith.constant 0 : index
    %121 = vector.load %arg7[%c0_52, %c0_53, %c0_54] : memref<2x1x32xf32, #tpu.memory_space<vmem>>, vector<1x1x32xf32>
    %122 = vector.shape_cast %121 : vector<1x1x32xf32> to vector<1x32xf32>
    %123 = vector.broadcast %122 : vector<1x32xf32> to vector<16x32xf32>
    %124 = arith.addf %120, %123 : vector<16x32xf32>
    %125 = arith.addf %124, %22 : vector<16x32xf32>
    %c0_55 = arith.constant 0 : index
    %c0_56 = arith.constant 0 : index
    %c0_57 = arith.constant 0 : index
    %126 = vector.load %arg8[%c0_55, %c0_56, %c0_57] : memref<2x1x32xf32, #tpu.memory_space<vmem>>, vector<1x1x32xf32>
    %127 = vector.shape_cast %126 : vector<1x1x32xf32> to vector<1x32xf32>
    %c0_58 = arith.constant 0 : index
    %c0_59 = arith.constant 0 : index
    %c0_60 = arith.constant 0 : index
    %128 = vector.load %arg9[%c0_58, %c0_59, %c0_60] : memref<2x1x32xf32, #tpu.memory_space<vmem>>, vector<1x1x32xf32>
    %129 = vector.shape_cast %128 : vector<1x1x32xf32> to vector<1x32xf32>
    %cst_61 = arith.constant dense<0.000000e+00> : vector<16xf32>
    %130 = vector.multi_reduction <add>, %125, %cst_61 [1] : vector<16x32xf32> to vector<16xf32>
    %131 = vector.shape_cast %130 : vector<16xf32> to vector<16x1xf32>
    %cst_62 = arith.constant 3.200000e+01 : f32
    %132 = vector.broadcast %cst_62 : f32 to vector<16x1xf32>
    %133 = arith.divf %131, %132 : vector<16x1xf32>
    %134 = vector.broadcast %133 : vector<16x1xf32> to vector<16x32xf32>
    %135 = arith.subf %125, %134 : vector<16x32xf32>
    %136 = arith.mulf %135, %135 : vector<16x32xf32>
    %cst_63 = arith.constant dense<0.000000e+00> : vector<16xf32>
    %137 = vector.multi_reduction <add>, %136, %cst_63 [1] : vector<16x32xf32> to vector<16xf32>
    %138 = vector.shape_cast %137 : vector<16xf32> to vector<16x1xf32>
    %cst_64 = arith.constant 3.200000e+01 : f32
    %139 = vector.broadcast %cst_64 : f32 to vector<16x1xf32>
    %140 = arith.divf %138, %139 : vector<16x1xf32>
    %cst_65 = arith.constant 9.99999996E-13 : f32
    %141 = vector.broadcast %cst_65 : f32 to vector<16x1xf32>
    %142 = arith.addf %140, %141 : vector<16x1xf32>
    %143 = math.rsqrt %142 : vector<16x1xf32>
    %144 = vector.broadcast %143 : vector<16x1xf32> to vector<16x32xf32>
    %145 = arith.mulf %135, %144 : vector<16x32xf32>
    %146 = vector.broadcast %127 : vector<1x32xf32> to vector<16x32xf32>
    %147 = arith.mulf %145, %146 : vector<16x32xf32>
    %148 = vector.broadcast %129 : vector<1x32xf32> to vector<16x32xf32>
    %149 = arith.addf %147, %148 : vector<16x32xf32>
    %c0_66 = arith.constant 0 : index
    %c0_67 = arith.constant 0 : index
    %c0_68 = arith.constant 0 : index
    %150 = vector.load %arg10[%c0_66, %c0_67, %c0_68] : memref<2x32x64xf32, #tpu.memory_space<vmem>>, vector<1x32x64xf32>
    %151 = vector.shape_cast %150 : vector<1x32x64xf32> to vector<32x64xf32>
    %152 = arith.truncf %149 : vector<16x32xf32> to vector<16x32xbf16>
    %153 = arith.truncf %151 : vector<32x64xf32> to vector<32x64xbf16>
    %cst_69 = arith.constant dense<0.000000e+00> : vector<16x64xf32>
    %154 = tpu.matmul %152, %153, %cst_69 {dimension_numbers = #tpu.dot_dimension_numbers<[1], [0], [0], [1], [0, 0, 1, 1], [], []>} : vector<16x32xbf16>, vector<32x64xbf16>, vector<16x64xf32> -> vector<16x64xf32>
    %c0_70 = arith.constant 0 : index
    %c0_71 = arith.constant 0 : index
    %c0_72 = arith.constant 0 : index
    %155 = vector.load %arg11[%c0_70, %c0_71, %c0_72] : memref<2x1x64xf32, #tpu.memory_space<vmem>>, vector<1x1x64xf32>
    %156 = vector.shape_cast %155 : vector<1x1x64xf32> to vector<1x64xf32>
    %157 = vector.broadcast %156 : vector<1x64xf32> to vector<16x64xf32>
    %158 = arith.addf %154, %157 : vector<16x64xf32>
    %cst_73 = arith.constant 5.000000e-01 : f32
    %159 = vector.broadcast %cst_73 : f32 to vector<16x64xf32>
    %160 = arith.mulf %159, %158 : vector<16x64xf32>
    %cst_74 = arith.constant 4.471500e-02 : f32
    %161 = vector.broadcast %cst_74 : f32 to vector<16x64xf32>
    %162 = arith.mulf %161, %158 : vector<16x64xf32>
    %163 = arith.mulf %162, %158 : vector<16x64xf32>
    %164 = arith.mulf %163, %158 : vector<16x64xf32>
    %165 = arith.addf %158, %164 : vector<16x64xf32>
    %cst_75 = arith.constant 0.797884583 : f32
    %166 = vector.broadcast %cst_75 : f32 to vector<16x64xf32>
    %167 = arith.mulf %166, %165 : vector<16x64xf32>
    %168 = math.tanh %167 : vector<16x64xf32>
    %cst_76 = arith.constant 1.000000e+00 : f32
    %169 = vector.broadcast %cst_76 : f32 to vector<16x64xf32>
    %170 = arith.addf %169, %168 : vector<16x64xf32>
    %171 = arith.mulf %160, %170 : vector<16x64xf32>
    %c0_77 = arith.constant 0 : index
    %c0_78 = arith.constant 0 : index
    %c0_79 = arith.constant 0 : index
    %172 = vector.load %arg12[%c0_77, %c0_78, %c0_79] : memref<2x64x32xf32, #tpu.memory_space<vmem>>, vector<1x64x32xf32>
    %173 = vector.shape_cast %172 : vector<1x64x32xf32> to vector<64x32xf32>
    %174 = arith.truncf %171 : vector<16x64xf32> to vector<16x64xbf16>
    %175 = arith.truncf %173 : vector<64x32xf32> to vector<64x32xbf16>
    %cst_80 = arith.constant dense<0.000000e+00> : vector<16x32xf32>
    %176 = tpu.matmul %174, %175, %cst_80 {dimension_numbers = #tpu.dot_dimension_numbers<[1], [0], [0], [1], [0, 0, 1, 1], [], []>} : vector<16x64xbf16>, vector<64x32xbf16>, vector<16x32xf32> -> vector<16x32xf32>
    %c0_81 = arith.constant 0 : index
    %c0_82 = arith.constant 0 : index
    %c0_83 = arith.constant 0 : index
    %177 = vector.load %arg13[%c0_81, %c0_82, %c0_83] : memref<2x1x32xf32, #tpu.memory_space<vmem>>, vector<1x1x32xf32>
    %178 = vector.shape_cast %177 : vector<1x1x32xf32> to vector<1x32xf32>
    %179 = vector.broadcast %178 : vector<1x32xf32> to vector<16x32xf32>
    %180 = arith.addf %176, %179 : vector<16x32xf32>
    %181 = arith.addf %180, %149 : vector<16x32xf32>
    %c0_84 = arith.constant 0 : index
    %c0_85 = arith.constant 0 : index
    %c0_86 = arith.constant 0 : index
    %182 = vector.load %arg14[%c0_84, %c0_85, %c0_86] : memref<2x1x32xf32, #tpu.memory_space<vmem>>, vector<1x1x32xf32>
    %183 = vector.shape_cast %182 : vector<1x1x32xf32> to vector<1x32xf32>
    %c0_87 = arith.constant 0 : index
    %c0_88 = arith.constant 0 : index
    %c0_89 = arith.constant 0 : index
    %184 = vector.load %arg15[%c0_87, %c0_88, %c0_89] : memref<2x1x32xf32, #tpu.memory_space<vmem>>, vector<1x1x32xf32>
    %185 = vector.shape_cast %184 : vector<1x1x32xf32> to vector<1x32xf32>
    %cst_90 = arith.constant dense<0.000000e+00> : vector<16xf32>
    %186 = vector.multi_reduction <add>, %181, %cst_90 [1] : vector<16x32xf32> to vector<16xf32>
    %187 = vector.shape_cast %186 : vector<16xf32> to vector<16x1xf32>
    %cst_91 = arith.constant 3.200000e+01 : f32
    %188 = vector.broadcast %cst_91 : f32 to vector<16x1xf32>
    %189 = arith.divf %187, %188 : vector<16x1xf32>
    %190 = vector.broadcast %189 : vector<16x1xf32> to vector<16x32xf32>
    %191 = arith.subf %181, %190 : vector<16x32xf32>
    %192 = arith.mulf %191, %191 : vector<16x32xf32>
    %cst_92 = arith.constant dense<0.000000e+00> : vector<16xf32>
    %193 = vector.multi_reduction <add>, %192, %cst_92 [1] : vector<16x32xf32> to vector<16xf32>
    %194 = vector.shape_cast %193 : vector<16xf32> to vector<16x1xf32>
    %cst_93 = arith.constant 3.200000e+01 : f32
    %195 = vector.broadcast %cst_93 : f32 to vector<16x1xf32>
    %196 = arith.divf %194, %195 : vector<16x1xf32>
    %cst_94 = arith.constant 9.99999996E-13 : f32
    %197 = vector.broadcast %cst_94 : f32 to vector<16x1xf32>
    %198 = arith.addf %196, %197 : vector<16x1xf32>
    %199 = math.rsqrt %198 : vector<16x1xf32>
    %200 = vector.broadcast %199 : vector<16x1xf32> to vector<16x32xf32>
    %201 = arith.mulf %191, %200 : vector<16x32xf32>
    %202 = vector.broadcast %183 : vector<1x32xf32> to vector<16x32xf32>
    %203 = arith.mulf %201, %202 : vector<16x32xf32>
    %204 = vector.broadcast %185 : vector<1x32xf32> to vector<16x32xf32>
    %205 = arith.addf %203, %204 : vector<16x32xf32>
    %c1 = arith.constant 1 : index
    %c0_95 = arith.constant 0 : index
    %c0_96 = arith.constant 0 : index
    %206 = vector.load %arg4[%c1, %c0_95, %c0_96] : memref<2x32x96xf32, #tpu.memory_space<vmem>>, vector<1x32x96xf32>
    %207 = vector.shape_cast %206 : vector<1x32x96xf32> to vector<32x96xf32>
    %208 = arith.truncf %205 : vector<16x32xf32> to vector<16x32xbf16>
    %209 = arith.truncf %207 : vector<32x96xf32> to vector<32x96xbf16>
    %cst_97 = arith.constant dense<0.000000e+00> : vector<16x96xf32>
    %210 = tpu.matmul %208, %209, %cst_97 {dimension_numbers = #tpu.dot_dimension_numbers<[1], [0], [0], [1], [0, 0, 1, 1], [], []>} : vector<16x32xbf16>, vector<32x96xbf16>, vector<16x96xf32> -> vector<16x96xf32>
    %c1_98 = arith.constant 1 : index
    %c0_99 = arith.constant 0 : index
    %c0_100 = arith.constant 0 : index
    %211 = vector.load %arg5[%c1_98, %c0_99, %c0_100] : memref<2x1x96xf32, #tpu.memory_space<vmem>>, vector<1x1x96xf32>
    %212 = vector.shape_cast %211 : vector<1x1x96xf32> to vector<1x96xf32>
    %213 = vector.broadcast %212 : vector<1x96xf32> to vector<16x96xf32>
    %214 = arith.addf %210, %213 : vector<16x96xf32>
    %215 = vector.extract_strided_slice %27 {offsets = [0, 0], sizes = [1, 8], strides = [1, 1]} : vector<2x8xf32> to vector<1x8xf32>
    %216 = vector.extract_strided_slice %214 {offsets = [0, 0], sizes = [8, 16], strides = [1, 1]} : vector<16x96xf32> to vector<8x16xf32>
    %217 = vector.extract_strided_slice %214 {offsets = [0, 32], sizes = [8, 16], strides = [1, 1]} : vector<16x96xf32> to vector<8x16xf32>
    %218 = vector.extract_strided_slice %214 {offsets = [0, 64], sizes = [8, 16], strides = [1, 1]} : vector<16x96xf32> to vector<8x16xf32>
    %cst_101 = arith.constant dense<0.000000e+00> : vector<8x8xf32>
    %219 = tpu.matmul %216, %217, %cst_101 {dimension_numbers = #tpu.dot_dimension_numbers<[1], [1], [0], [0], [0, 0, 1, 0], [], []>} : vector<8x16xf32>, vector<8x16xf32>, vector<8x8xf32> -> vector<8x8xf32>
    %cst_102 = arith.constant 2.500000e-01 : f32
    %220 = vector.broadcast %cst_102 : f32 to vector<8x8xf32>
    %221 = arith.mulf %219, %220 : vector<8x8xf32>
    %222 = vector.broadcast %215 : vector<1x8xf32> to vector<8x8xf32>
    %223 = arith.addf %221, %222 : vector<8x8xf32>
    %cst_103 = arith.constant dense<0xFF800000> : vector<8xf32>
    %224 = vector.multi_reduction <maximumf>, %223, %cst_103 [1] : vector<8x8xf32> to vector<8xf32>
    %225 = vector.shape_cast %224 : vector<8xf32> to vector<8x1xf32>
    %226 = vector.broadcast %225 : vector<8x1xf32> to vector<8x8xf32>
    %227 = arith.subf %223, %226 : vector<8x8xf32>
    %228 = math.exp %227 : vector<8x8xf32>
    %cst_104 = arith.constant dense<0.000000e+00> : vector<8xf32>
    %229 = vector.multi_reduction <add>, %228, %cst_104 [1] : vector<8x8xf32> to vector<8xf32>
    %230 = vector.shape_cast %229 : vector<8xf32> to vector<8x1xf32>
    %231 = vector.broadcast %230 : vector<8x1xf32> to vector<8x8xf32>
    %232 = arith.divf %228, %231 : vector<8x8xf32>
    %cst_105 = arith.constant dense<0.000000e+00> : vector<8x16xf32>
    %233 = tpu.matmul %232, %218, %cst_105 {dimension_numbers = #tpu.dot_dimension_numbers<[1], [0], [0], [1], [0, 0, 1, 1], [], []>} : vector<8x8xf32>, vector<8x16xf32>, vector<8x16xf32> -> vector<8x16xf32>
    %c0_106 = arith.constant 0 : index
    %c0_107 = arith.constant 0 : index
    %234 = vector.load %arg19[%c0_106, %c0_107] : memref<16x32xf32, #tpu.memory_space<vmem>>, vector<8x16xf32>
    tpu.vector_store %arg19[%c0_106, %c0_107], %233 {strides = array<i32>} : memref<16x32xf32, #tpu.memory_space<vmem>>, vector<8x16xf32>,
    %235 = vector.extract_strided_slice %214 {offsets = [0, 16], sizes = [8, 16], strides = [1, 1]} : vector<16x96xf32> to vector<8x16xf32>
    %236 = vector.extract_strided_slice %214 {offsets = [0, 48], sizes = [8, 16], strides = [1, 1]} : vector<16x96xf32> to vector<8x16xf32>
    %237 = vector.extract_strided_slice %214 {offsets = [0, 80], sizes = [8, 16], strides = [1, 1]} : vector<16x96xf32> to vector<8x16xf32>
    %cst_108 = arith.constant dense<0.000000e+00> : vector<8x8xf32>
    %238 = tpu.matmul %235, %236, %cst_108 {dimension_numbers = #tpu.dot_dimension_numbers<[1], [1], [0], [0], [0, 0, 1, 0], [], []>} : vector<8x16xf32>, vector<8x16xf32>, vector<8x8xf32> -> vector<8x8xf32>
    %cst_109 = arith.constant 2.500000e-01 : f32
    %239 = vector.broadcast %cst_109 : f32 to vector<8x8xf32>
    %240 = arith.mulf %238, %239 : vector<8x8xf32>
    %241 = vector.broadcast %215 : vector<1x8xf32> to vector<8x8xf32>
    %242 = arith.addf %240, %241 : vector<8x8xf32>
    %cst_110 = arith.constant dense<0xFF800000> : vector<8xf32>
    %243 = vector.multi_reduction <maximumf>, %242, %cst_110 [1] : vector<8x8xf32> to vector<8xf32>
    %244 = vector.shape_cast %243 : vector<8xf32> to vector<8x1xf32>
    %245 = vector.broadcast %244 : vector<8x1xf32> to vector<8x8xf32>
    %246 = arith.subf %242, %245 : vector<8x8xf32>
    %247 = math.exp %246 : vector<8x8xf32>
    %cst_111 = arith.constant dense<0.000000e+00> : vector<8xf32>
    %248 = vector.multi_reduction <add>, %247, %cst_111 [1] : vector<8x8xf32> to vector<8xf32>
    %249 = vector.shape_cast %248 : vector<8xf32> to vector<8x1xf32>
    %250 = vector.broadcast %249 : vector<8x1xf32> to vector<8x8xf32>
    %251 = arith.divf %247, %250 : vector<8x8xf32>
    %cst_112 = arith.constant dense<0.000000e+00> : vector<8x16xf32>
    %252 = tpu.matmul %251, %237, %cst_112 {dimension_numbers = #tpu.dot_dimension_numbers<[1], [0], [0], [1], [0, 0, 1, 1], [], []>} : vector<8x8xf32>, vector<8x16xf32>, vector<8x16xf32> -> vector<8x16xf32>
    %c0_113 = arith.constant 0 : index
    %c16_114 = arith.constant 16 : index
    %253 = vector.load %arg19[%c0_113, %c16_114] : memref<16x32xf32, #tpu.memory_space<vmem>>, vector<8x16xf32>
    tpu.vector_store %arg19[%c0_113, %c16_114], %252 {strides = array<i32>} : memref<16x32xf32, #tpu.memory_space<vmem>>, vector<8x16xf32>,
    %254 = vector.extract_strided_slice %27 {offsets = [1, 0], sizes = [1, 8], strides = [1, 1]} : vector<2x8xf32> to vector<1x8xf32>
    %255 = vector.extract_strided_slice %214 {offsets = [8, 0], sizes = [8, 16], strides = [1, 1]} : vector<16x96xf32> to vector<8x16xf32>
    %256 = vector.extract_strided_slice %214 {offsets = [8, 32], sizes = [8, 16], strides = [1, 1]} : vector<16x96xf32> to vector<8x16xf32>
    %257 = vector.extract_strided_slice %214 {offsets = [8, 64], sizes = [8, 16], strides = [1, 1]} : vector<16x96xf32> to vector<8x16xf32>
    %cst_115 = arith.constant dense<0.000000e+00> : vector<8x8xf32>
    %258 = tpu.matmul %255, %256, %cst_115 {dimension_numbers = #tpu.dot_dimension_numbers<[1], [1], [0], [0], [0, 0, 1, 0], [], []>} : vector<8x16xf32>, vector<8x16xf32>, vector<8x8xf32> -> vector<8x8xf32>
    %cst_116 = arith.constant 2.500000e-01 : f32
    %259 = vector.broadcast %cst_116 : f32 to vector<8x8xf32>
    %260 = arith.mulf %258, %259 : vector<8x8xf32>
    %261 = vector.broadcast %254 : vector<1x8xf32> to vector<8x8xf32>
    %262 = arith.addf %260, %261 : vector<8x8xf32>
    %cst_117 = arith.constant dense<0xFF800000> : vector<8xf32>
    %263 = vector.multi_reduction <maximumf>, %262, %cst_117 [1] : vector<8x8xf32> to vector<8xf32>
    %264 = vector.shape_cast %263 : vector<8xf32> to vector<8x1xf32>
    %265 = vector.broadcast %264 : vector<8x1xf32> to vector<8x8xf32>
    %266 = arith.subf %262, %265 : vector<8x8xf32>
    %267 = math.exp %266 : vector<8x8xf32>
    %cst_118 = arith.constant dense<0.000000e+00> : vector<8xf32>
    %268 = vector.multi_reduction <add>, %267, %cst_118 [1] : vector<8x8xf32> to vector<8xf32>
    %269 = vector.shape_cast %268 : vector<8xf32> to vector<8x1xf32>
    %270 = vector.broadcast %269 : vector<8x1xf32> to vector<8x8xf32>
    %271 = arith.divf %267, %270 : vector<8x8xf32>
    %cst_119 = arith.constant dense<0.000000e+00> : vector<8x16xf32>
    %272 = tpu.matmul %271, %257, %cst_119 {dimension_numbers = #tpu.dot_dimension_numbers<[1], [0], [0], [1], [0, 0, 1, 1], [], []>} : vector<8x8xf32>, vector<8x16xf32>, vector<8x16xf32> -> vector<8x16xf32>
    %c8_120 = arith.constant 8 : index
    %c0_121 = arith.constant 0 : index
    %273 = vector.load %arg19[%c8_120, %c0_121] : memref<16x32xf32, #tpu.memory_space<vmem>>, vector<8x16xf32>
    tpu.vector_store %arg19[%c8_120, %c0_121], %272 {strides = array<i32>} : memref<16x32xf32, #tpu.memory_space<vmem>>, vector<8x16xf32>,
    %274 = vector.extract_strided_slice %214 {offsets = [8, 16], sizes = [8, 16], strides = [1, 1]} : vector<16x96xf32> to vector<8x16xf32>
    %275 = vector.extract_strided_slice %214 {offsets = [8, 48], sizes = [8, 16], strides = [1, 1]} : vector<16x96xf32> to vector<8x16xf32>
    %276 = vector.extract_strided_slice %214 {offsets = [8, 80], sizes = [8, 16], strides = [1, 1]} : vector<16x96xf32> to vector<8x16xf32>
    %cst_122 = arith.constant dense<0.000000e+00> : vector<8x8xf32>
    %277 = tpu.matmul %274, %275, %cst_122 {dimension_numbers = #tpu.dot_dimension_numbers<[1], [1], [0], [0], [0, 0, 1, 0], [], []>} : vector<8x16xf32>, vector<8x16xf32>, vector<8x8xf32> -> vector<8x8xf32>
    %cst_123 = arith.constant 2.500000e-01 : f32
    %278 = vector.broadcast %cst_123 : f32 to vector<8x8xf32>
    %279 = arith.mulf %277, %278 : vector<8x8xf32>
    %280 = vector.broadcast %254 : vector<1x8xf32> to vector<8x8xf32>
    %281 = arith.addf %279, %280 : vector<8x8xf32>
    %cst_124 = arith.constant dense<0xFF800000> : vector<8xf32>
    %282 = vector.multi_reduction <maximumf>, %281, %cst_124 [1] : vector<8x8xf32> to vector<8xf32>
    %283 = vector.shape_cast %282 : vector<8xf32> to vector<8x1xf32>
    %284 = vector.broadcast %283 : vector<8x1xf32> to vector<8x8xf32>
    %285 = arith.subf %281, %284 : vector<8x8xf32>
    %286 = math.exp %285 : vector<8x8xf32>
    %cst_125 = arith.constant dense<0.000000e+00> : vector<8xf32>
    %287 = vector.multi_reduction <add>, %286, %cst_125 [1] : vector<8x8xf32> to vector<8xf32>
    %288 = vector.shape_cast %287 : vector<8xf32> to vector<8x1xf32>
    %289 = vector.broadcast %288 : vector<8x1xf32> to vector<8x8xf32>
    %290 = arith.divf %286, %289 : vector<8x8xf32>
    %cst_126 = arith.constant dense<0.000000e+00> : vector<8x16xf32>
    %291 = tpu.matmul %290, %276, %cst_126 {dimension_numbers = #tpu.dot_dimension_numbers<[1], [0], [0], [1], [0, 0, 1, 1], [], []>} : vector<8x8xf32>, vector<8x16xf32>, vector<8x16xf32> -> vector<8x16xf32>
    %c8_127 = arith.constant 8 : index
    %c16_128 = arith.constant 16 : index
    %292 = vector.load %arg19[%c8_127, %c16_128] : memref<16x32xf32, #tpu.memory_space<vmem>>, vector<8x16xf32>
    tpu.vector_store %arg19[%c8_127, %c16_128], %291 {strides = array<i32>} : memref<16x32xf32, #tpu.memory_space<vmem>>, vector<8x16xf32>,
    %c0_129 = arith.constant 0 : index
    %c0_130 = arith.constant 0 : index
    %293 = vector.load %arg19[%c0_129, %c0_130] : memref<16x32xf32, #tpu.memory_space<vmem>>, vector<16x32xf32>
    %c1_131 = arith.constant 1 : index
    %c0_132 = arith.constant 0 : index
    %c0_133 = arith.constant 0 : index
    %294 = vector.load %arg6[%c1_131, %c0_132, %c0_133] : memref<2x32x32xf32, #tpu.memory_space<vmem>>, vector<1x32x32xf32>
    %295 = vector.shape_cast %294 : vector<1x32x32xf32> to vector<32x32xf32>
    %296 = arith.truncf %293 : vector<16x32xf32> to vector<16x32xbf16>
    %297 = arith.truncf %295 : vector<32x32xf32> to vector<32x32xbf16>
    %cst_134 = arith.constant dense<0.000000e+00> : vector<16x32xf32>
    %298 = tpu.matmul %296, %297, %cst_134 {dimension_numbers = #tpu.dot_dimension_numbers<[1], [0], [0], [1], [0, 0, 1, 1], [], []>} : vector<16x32xbf16>, vector<32x32xbf16>, vector<16x32xf32> -> vector<16x32xf32>
    %c1_135 = arith.constant 1 : index
    %c0_136 = arith.constant 0 : index
    %c0_137 = arith.constant 0 : index
    %299 = vector.load %arg7[%c1_135, %c0_136, %c0_137] : memref<2x1x32xf32, #tpu.memory_space<vmem>>, vector<1x1x32xf32>
    %300 = vector.shape_cast %299 : vector<1x1x32xf32> to vector<1x32xf32>
    %301 = vector.broadcast %300 : vector<1x32xf32> to vector<16x32xf32>
    %302 = arith.addf %298, %301 : vector<16x32xf32>
    %303 = arith.addf %302, %205 : vector<16x32xf32>
    %c1_138 = arith.constant 1 : index
    %c0_139 = arith.constant 0 : index
    %c0_140 = arith.constant 0 : index
    %304 = vector.load %arg8[%c1_138, %c0_139, %c0_140] : memref<2x1x32xf32, #tpu.memory_space<vmem>>, vector<1x1x32xf32>
    %305 = vector.shape_cast %304 : vector<1x1x32xf32> to vector<1x32xf32>
    %c1_141 = arith.constant 1 : index
    %c0_142 = arith.constant 0 : index
    %c0_143 = arith.constant 0 : index
    %306 = vector.load %arg9[%c1_141, %c0_142, %c0_143] : memref<2x1x32xf32, #tpu.memory_space<vmem>>, vector<1x1x32xf32>
    %307 = vector.shape_cast %306 : vector<1x1x32xf32> to vector<1x32xf32>
    %cst_144 = arith.constant dense<0.000000e+00> : vector<16xf32>
    %308 = vector.multi_reduction <add>, %303, %cst_144 [1] : vector<16x32xf32> to vector<16xf32>
    %309 = vector.shape_cast %308 : vector<16xf32> to vector<16x1xf32>
    %cst_145 = arith.constant 3.200000e+01 : f32
    %310 = vector.broadcast %cst_145 : f32 to vector<16x1xf32>
    %311 = arith.divf %309, %310 : vector<16x1xf32>
    %312 = vector.broadcast %311 : vector<16x1xf32> to vector<16x32xf32>
    %313 = arith.subf %303, %312 : vector<16x32xf32>
    %314 = arith.mulf %313, %313 : vector<16x32xf32>
    %cst_146 = arith.constant dense<0.000000e+00> : vector<16xf32>
    %315 = vector.multi_reduction <add>, %314, %cst_146 [1] : vector<16x32xf32> to vector<16xf32>
    %316 = vector.shape_cast %315 : vector<16xf32> to vector<16x1xf32>
    %cst_147 = arith.constant 3.200000e+01 : f32
    %317 = vector.broadcast %cst_147 : f32 to vector<16x1xf32>
    %318 = arith.divf %316, %317 : vector<16x1xf32>
    %cst_148 = arith.constant 9.99999996E-13 : f32
    %319 = vector.broadcast %cst_148 : f32 to vector<16x1xf32>
    %320 = arith.addf %318, %319 : vector<16x1xf32>
    %321 = math.rsqrt %320 : vector<16x1xf32>
    %322 = vector.broadcast %321 : vector<16x1xf32> to vector<16x32xf32>
    %323 = arith.mulf %313, %322 : vector<16x32xf32>
    %324 = vector.broadcast %305 : vector<1x32xf32> to vector<16x32xf32>
    %325 = arith.mulf %323, %324 : vector<16x32xf32>
    %326 = vector.broadcast %307 : vector<1x32xf32> to vector<16x32xf32>
    %327 = arith.addf %325, %326 : vector<16x32xf32>
    %c1_149 = arith.constant 1 : index
    %c0_150 = arith.constant 0 : index
    %c0_151 = arith.constant 0 : index
    %328 = vector.load %arg10[%c1_149, %c0_150, %c0_151] : memref<2x32x64xf32, #tpu.memory_space<vmem>>, vector<1x32x64xf32>
    %329 = vector.shape_cast %328 : vector<1x32x64xf32> to vector<32x64xf32>
    %330 = arith.truncf %327 : vector<16x32xf32> to vector<16x32xbf16>
    %331 = arith.truncf %329 : vector<32x64xf32> to vector<32x64xbf16>
    %cst_152 = arith.constant dense<0.000000e+00> : vector<16x64xf32>
    %332 = tpu.matmul %330, %331, %cst_152 {dimension_numbers = #tpu.dot_dimension_numbers<[1], [0], [0], [1], [0, 0, 1, 1], [], []>} : vector<16x32xbf16>, vector<32x64xbf16>, vector<16x64xf32> -> vector<16x64xf32>
    %c1_153 = arith.constant 1 : index
    %c0_154 = arith.constant 0 : index
    %c0_155 = arith.constant 0 : index
    %333 = vector.load %arg11[%c1_153, %c0_154, %c0_155] : memref<2x1x64xf32, #tpu.memory_space<vmem>>, vector<1x1x64xf32>
    %334 = vector.shape_cast %333 : vector<1x1x64xf32> to vector<1x64xf32>
    %335 = vector.broadcast %334 : vector<1x64xf32> to vector<16x64xf32>
    %336 = arith.addf %332, %335 : vector<16x64xf32>
    %cst_156 = arith.constant 5.000000e-01 : f32
    %337 = vector.broadcast %cst_156 : f32 to vector<16x64xf32>
    %338 = arith.mulf %337, %336 : vector<16x64xf32>
    %cst_157 = arith.constant 4.471500e-02 : f32
    %339 = vector.broadcast %cst_157 : f32 to vector<16x64xf32>
    %340 = arith.mulf %339, %336 : vector<16x64xf32>
    %341 = arith.mulf %340, %336 : vector<16x64xf32>
    %342 = arith.mulf %341, %336 : vector<16x64xf32>
    %343 = arith.addf %336, %342 : vector<16x64xf32>
    %cst_158 = arith.constant 0.797884583 : f32
    %344 = vector.broadcast %cst_158 : f32 to vector<16x64xf32>
    %345 = arith.mulf %344, %343 : vector<16x64xf32>
    %346 = math.tanh %345 : vector<16x64xf32>
    %cst_159 = arith.constant 1.000000e+00 : f32
    %347 = vector.broadcast %cst_159 : f32 to vector<16x64xf32>
    %348 = arith.addf %347, %346 : vector<16x64xf32>
    %349 = arith.mulf %338, %348 : vector<16x64xf32>
    %c1_160 = arith.constant 1 : index
    %c0_161 = arith.constant 0 : index
    %c0_162 = arith.constant 0 : index
    %350 = vector.load %arg12[%c1_160, %c0_161, %c0_162] : memref<2x64x32xf32, #tpu.memory_space<vmem>>, vector<1x64x32xf32>
    %351 = vector.shape_cast %350 : vector<1x64x32xf32> to vector<64x32xf32>
    %352 = arith.truncf %349 : vector<16x64xf32> to vector<16x64xbf16>
    %353 = arith.truncf %351 : vector<64x32xf32> to vector<64x32xbf16>
    %cst_163 = arith.constant dense<0.000000e+00> : vector<16x32xf32>
    %354 = tpu.matmul %352, %353, %cst_163 {dimension_numbers = #tpu.dot_dimension_numbers<[1], [0], [0], [1], [0, 0, 1, 1], [], []>} : vector<16x64xbf16>, vector<64x32xbf16>, vector<16x32xf32> -> vector<16x32xf32>
    %c1_164 = arith.constant 1 : index
    %c0_165 = arith.constant 0 : index
    %c0_166 = arith.constant 0 : index
    %355 = vector.load %arg13[%c1_164, %c0_165, %c0_166] : memref<2x1x32xf32, #tpu.memory_space<vmem>>, vector<1x1x32xf32>
    %356 = vector.shape_cast %355 : vector<1x1x32xf32> to vector<1x32xf32>
    %357 = vector.broadcast %356 : vector<1x32xf32> to vector<16x32xf32>
    %358 = arith.addf %354, %357 : vector<16x32xf32>
    %359 = arith.addf %358, %327 : vector<16x32xf32>
    %c1_167 = arith.constant 1 : index
    %c0_168 = arith.constant 0 : index
    %c0_169 = arith.constant 0 : index
    %360 = vector.load %arg14[%c1_167, %c0_168, %c0_169] : memref<2x1x32xf32, #tpu.memory_space<vmem>>, vector<1x1x32xf32>
    %361 = vector.shape_cast %360 : vector<1x1x32xf32> to vector<1x32xf32>
    %c1_170 = arith.constant 1 : index
    %c0_171 = arith.constant 0 : index
    %c0_172 = arith.constant 0 : index
    %362 = vector.load %arg15[%c1_170, %c0_171, %c0_172] : memref<2x1x32xf32, #tpu.memory_space<vmem>>, vector<1x1x32xf32>
    %363 = vector.shape_cast %362 : vector<1x1x32xf32> to vector<1x32xf32>
    %cst_173 = arith.constant dense<0.000000e+00> : vector<16xf32>
    %364 = vector.multi_reduction <add>, %359, %cst_173 [1] : vector<16x32xf32> to vector<16xf32>
    %365 = vector.shape_cast %364 : vector<16xf32> to vector<16x1xf32>
    %cst_174 = arith.constant 3.200000e+01 : f32
    %366 = vector.broadcast %cst_174 : f32 to vector<16x1xf32>
    %367 = arith.divf %365, %366 : vector<16x1xf32>
    %368 = vector.broadcast %367 : vector<16x1xf32> to vector<16x32xf32>
    %369 = arith.subf %359, %368 : vector<16x32xf32>
    %370 = arith.mulf %369, %369 : vector<16x32xf32>
    %cst_175 = arith.constant dense<0.000000e+00> : vector<16xf32>
    %371 = vector.multi_reduction <add>, %370, %cst_175 [1] : vector<16x32xf32> to vector<16xf32>
    %372 = vector.shape_cast %371 : vector<16xf32> to vector<16x1xf32>
    %cst_176 = arith.constant 3.200000e+01 : f32
    %373 = vector.broadcast %cst_176 : f32 to vector<16x1xf32>
    %374 = arith.divf %372, %373 : vector<16x1xf32>
    %cst_177 = arith.constant 9.99999996E-13 : f32
    %375 = vector.broadcast %cst_177 : f32 to vector<16x1xf32>
    %376 = arith.addf %374, %375 : vector<16x1xf32>
    %377 = math.rsqrt %376 : vector<16x1xf32>
    %378 = vector.broadcast %377 : vector<16x1xf32> to vector<16x32xf32>
    %379 = arith.mulf %369, %378 : vector<16x32xf32>
    %380 = vector.broadcast %361 : vector<1x32xf32> to vector<16x32xf32>
    %381 = arith.mulf %379, %380 : vector<16x32xf32>
    %382 = vector.broadcast %363 : vector<1x32xf32> to vector<16x32xf32>
    %383 = arith.addf %381, %382 : vector<16x32xf32>
    %c0_178 = arith.constant 0 : index
    %c0_179 = arith.constant 0 : index
    %384 = vector.load %arg16[%c0_178, %c0_179] : memref<32x32xf32, #tpu.memory_space<vmem>>, vector<32x32xf32>
    %c0_180 = arith.constant 0 : index
    %c0_181 = arith.constant 0 : index
    %385 = vector.load %arg17[%c0_180, %c0_181] : memref<1x32xf32, #tpu.memory_space<vmem>>, vector<1x32xf32>
    %386 = vector.extract_strided_slice %383 {offsets = [0, 0], sizes = [1, 32], strides = [1, 1]} : vector<16x32xf32> to vector<1x32xf32>
    %387 = arith.truncf %386 : vector<1x32xf32> to vector<1x32xbf16>
    %388 = arith.truncf %384 : vector<32x32xf32> to vector<32x32xbf16>
    %cst_182 = arith.constant dense<0.000000e+00> : vector<1x32xf32>
    %389 = tpu.matmul %387, %388, %cst_182 {dimension_numbers = #tpu.dot_dimension_numbers<[1], [0], [0], [1], [0, 0, 1, 1], [], []>} : vector<1x32xbf16>, vector<32x32xbf16>, vector<1x32xf32> -> vector<1x32xf32>
    %390 = arith.addf %389, %385 : vector<1x32xf32>
    %391 = math.tanh %390 : vector<1x32xf32>
    %c0_183 = arith.constant 0 : index
    %c0_184 = arith.constant 0 : index
    %392 = vector.load %arg18[%c0_183, %c0_184] : memref<2x32xf32, #tpu.memory_space<vmem>>, vector<1x32xf32>
    tpu.vector_store %arg18[%c0_183, %c0_184], %391 {strides = array<i32>} : memref<2x32xf32, #tpu.memory_space<vmem>>, vector<1x32xf32>,
    %393 = vector.extract_strided_slice %383 {offsets = [8, 0], sizes = [1, 32], strides = [1, 1]} : vector<16x32xf32> to vector<1x32xf32>
    %394 = arith.truncf %393 : vector<1x32xf32> to vector<1x32xbf16>
    %395 = arith.truncf %384 : vector<32x32xf32> to vector<32x32xbf16>
    %cst_185 = arith.constant dense<0.000000e+00> : vector<1x32xf32>
    %396 = tpu.matmul %394, %395, %cst_185 {dimension_numbers = #tpu.dot_dimension_numbers<[1], [0], [0], [1], [0, 0, 1, 1], [], []>} : vector<1x32xbf16>, vector<32x32xbf16>, vector<1x32xf32> -> vector<1x32xf32>
    %397 = arith.addf %396, %385 : vector<1x32xf32>
    %398 = math.tanh %397 : vector<1x32xf32>
    %c1_186 = arith.constant 1 : index
    %c0_187 = arith.constant 0 : index
    %399 = vector.load %arg18[%c1_186, %c0_187] : memref<2x32xf32, #tpu.memory_space<vmem>>, vector<1x32xf32>
    tpu.vector_store %arg18[%c1_186, %c0_187], %398 {strides = array<i32>} : memref<2x32xf32, #tpu.memory_space<vmem>>, vector<1x32xf32>,
    return
  }
}

</mosaic_0001>

<bundles_post_ra>
// kernel: bert_forward.1
= control target key start
LH: loop header
LB: loop body
LE: loop exit
PB: predicated region body
PF: predicated region fallthrough
CT: control target
= control target key end

     0   :  { %s2038_s0 = inlined_call_operand.vmem [shape: f32[16,32], index: 0, kind: input, shape index: {}]   ;;  %s2039_s1 = inlined_call_operand.vmem [shape: f32[2,8], index: 1, kind: input, shape index: {}]   ;;  %s2040_s2 = inlined_call_operand.vmem [shape: f32[1,32], index: 2, kind: input, shape index: {}]   ;;  %s2041_s3 = inlined_call_operand.vmem [shape: f32[1,32], index: 3, kind: input, shape index: {}]   ;;  %s2042_s4 = inlined_call_operand.vmem [shape: f32[2,32,96], index: 4, kind: input, shape index: {}]   ;;  %s2043_s5 = inlined_call_operand.vmem [shape: f32[2,1,96], index: 5, kind: input, shape index: {}]   ;;  %s2044_s6 = inlined_call_operand.vmem [shape: f32[2,32,32], index: 6, kind: input, shape index: {}]   ;;  %s2045_s7 = inlined_call_operand.vmem [shape: f32[2,1,32], index: 7, kind: input, shape index: {}]   ;;  %s2046_s8 = inlined_call_operand.vmem [shape: f32[2,1,32], index: 8, kind: input, shape index: {}]   ;;  %s2047_s9 = inlined_call_operand.vmem [shape: f32[2,1,32], index: 9, kind: input, shape index: {}]   ;;  %s2048_s10 = inlined_call_operand.vmem [shape: f32[2,32,64], index: 10, kind: input, shape index: {}]   ;;  %s2049_s11 = inlined_call_operand.vmem [shape: f32[2,1,64], index: 11, kind: input, shape index: {}]   ;;  %s2050_s12 = inlined_call_operand.vmem [shape: f32[2,64,32], index: 12, kind: input, shape index: {}]   ;;  %s2051_s13 = inlined_call_operand.vmem [shape: f32[2,1,32], index: 13, kind: input, shape index: {}]   ;;  %s2052_s14 = inlined_call_operand.vmem [shape: f32[2,1,32], index: 14, kind: input, shape index: {}]   ;;  %s2053_s15 = inlined_call_operand.vmem [shape: f32[2,1,32], index: 15, kind: input, shape index: {}]   ;;  %s2054_s16 = inlined_call_operand.vmem [shape: f32[32,32], index: 16, kind: input, shape index: {}]   ;;  %s2055_s17 = inlined_call_operand.vmem [shape: f32[1,32], index: 17, kind: input, shape index: {}]   ;;  %s2056_s18 = inlined_call_operand.hbm [shape: f32[2,32], index: 18, kind: output, shape index: {}]  }
   0x1   :  { %2058 = sst [smem:[#allocation6_spill]] %s2038_s0 }
   0x2   :  { %2059 = sst [smem:[#allocation7_spill]] %s2039_s1 }
   0x3   :  { %2060 = sst [smem:[#allocation8_spill]] %s2040_s2 }
   0x4   :  { %s2061_s29 = sld [smem:[#allocation6_spill]]  ;;  %vm65_vm0 = vcmask 261120  }
   0xa   :  { %v61_v0 = vld [vmem:[%s2061_s29] sm:$0xff]  ;;  %v62_v2 = vld [vmem:[%s2061_s29 + $0x8] sm:$0xff] }
   0xb   :  { %v66_v1 = vsel %vm65_vm0, %v61_v0, 0.0  ;;  %v69_v3 = vsel %vm65_vm0, %v62_v2, 0.0 }
   0xc   :  { %67 = vadd.xlane.f32.xlu0 %v66_v1 }
   0xd   :  { %23 = vsyncpa [#allocation4], 0  ;;  %v1558_v4 = vmov 32.0   ;;  %v132_v21 = vld [vmem:[%s2042_s4 + $0x10] sm:$0xff]  ;;  %v133_v22 = vld [vmem:[%s2042_s4 + $0x18] sm:$0xff]  ;;  %s2062_s27 = sld [smem:[#allocation8_spill]] }
   0xe   :  { %1466 = vrcp.f32 %v1558_v4  ;;  %v136_v23 = vpack.c.bf16 %v133_v22, %v132_v21  ;;  %v130_v24 = vld [vmem:[%s2042_s4] sm:$0xff]  ;;  %v131_v25 = vld [vmem:[%s2042_s4 + $0x8] sm:$0xff]  ;;  %s1559_s19 = smov 112   ;;  %s1561_s1 = smov 64   ;;  %vm161_vm8 = vcmask 130048   ;;  %vm189_vm9 = vcmask 64512  }
   0xf   :  { %v135_v27 = vpack.c.bf16 %v131_v25, %v130_v24  ;;  %v1449_v51 = vld [vmem:[%s2041_s3] ss:$0 sm:$0xff]  ;;  %s1560_s3 = smov 96   ;;  %s1562_s20 = smov 80  }
  0x10   :  { %150 = vmatpush.bf16.msra.mxu0 %v136_v23  ;;  %v1450_v56 = vld [vmem:[%s2043_s5] ss:$0 sm:$0xff]  ;;  %s2063_s2 = sld [smem:[#allocation7_spill]]  ;;  %s1563_s23 = smov 48  }
  0x11   :  { %s1564_s24 = smov 16  }
  0x13   :  { %v1448_v46 = vld [vmem:[%s2062_s27] ss:$0 sm:$0xff] }
  0x14   :  { %70 = vadd.xlane.f32.xlu0 %v69_v3  ;;  %v1467_v5 = vpop.eup %1466  ;;  %151 = vmatpush.bf16.msra.mxu0 %v135_v27 }
  0x15   :  { %v73_v6 = vmul.f32 32.0, %v1467_v5  ;;  %vm77_vm1 = vweird.f32 %v1467_v5 }
  0x16   :  { %v127_v1 = vld [vmem:[%s2063_s2] sm:$0x3] }
  0x17   :  { %v74_v7 = vsub.f32 1.0, %v73_v6 }
  0x19   :  { %v75_v8 = vmul.f32 %v1467_v5, %v74_v7 }
  0x1b   :  { %v76_v9 = vadd.f32 %v1467_v5, %v75_v8 }
  0x1d   :  { %v1669_v10 = vsel %vm77_vm1, %v1467_v5, %v76_v9 }
  0x7f   :  { %v68_v11 = vpop.xlane.xlu0 %67 }
  0x80   :  { %v79_v12 = vmul.f32 %v1669_v10, %v68_v11 }
  0x82   :  { %v81_v13 = vsub.f32 %v61_v0, %v79_v12 }
  0x84   :  { %v83_v14 = vmul.f32 %v81_v13, %v81_v13 }
  0x86   :  { %v85_v15 = vsel %vm65_vm0, %v83_v14, 0.0 }
  0x87   :  { %86 = vadd.xlane.f32.xlu1 %v85_v15  ;;  %v71_v16 = vpop.xlane.xlu0 %70 }
  0x88   :  { %v80_v17 = vmul.f32 %v1669_v10, %v71_v16 }
  0x8a   :  { %v82_v18 = vsub.f32 %v62_v2, %v80_v17  ;;  %v128_v2 = vsub.f32 1.0, %v127_v1 }
  0x8c   :  { %v84_v19 = vmul.f32 %v82_v18, %v82_v18  ;;  %v129_v3 = vmul.f32 -1e+09, %v128_v2 }
  0x8e   :  { %v88_v20 = vsel %vm65_vm0, %v84_v19, 0.0  ;;  %v1722_v4 = vperm.slane %v129_v3, 0 }
  0x8f   :  { %89 = vadd.xlane.f32.xlu1 %v88_v20 }
  0xfa   :  { %v87_v26 = vpop.xlane.xlu1 %86 }
  0xfb   :  { %v91_v28 = vmul.f32 %v87_v26, %v1669_v10 }
  0xfd   :  { %v93_v29 = vadd.f32 1e-12, %v91_v28 }
  0xff   :  { %1468 = vrsqrt.f32 %v93_v29  ;;  %vm101_vm3 = vweird.f32 %v93_v29 }
 0x102   :  { %v90_v30 = vpop.xlane.xlu1 %89 }
 0x103   :  { %v92_v31 = vmul.f32 %v90_v30, %v1669_v10 }
 0x105   :  { %v1469_v32 = vpop.eup %1468  ;;  %v94_v33 = vadd.f32 1e-12, %v92_v31 }
 0x106   :  { %v96_v34 = vmul.f32 %v1469_v32, %v93_v29  ;;  %vm102_vm2 = vweird.f32 %v1469_v32 }
 0x107   :  { %1470 = vrsqrt.f32 %v94_v33  ;;  %vm103_vm4 = vmor %vm101_vm3, %vm102_vm2  ;;  %vm111_vm6 = vweird.f32 %v94_v33 }
 0x108   :  { %v97_v35 = vmul.f32 %v1469_v32, %v96_v34 }
 0x10a   :  { %v98_v36 = vmul.f32 0.5, %v97_v35 }
 0x10c   :  { %v99_v37 = vsub.f32 1.5, %v98_v36 }
 0x10d   :  { %v1471_v38 = vpop.eup %1470 }
 0x10e   :  { %v100_v39 = vmul.f32 %v1469_v32, %v99_v37  ;;  %v106_v40 = vmul.f32 %v1471_v38, %v94_v33  ;;  %vm112_vm5 = vweird.f32 %v1471_v38 }
 0x10f   :  { %vm113_vm7 = vmor %vm111_vm6, %vm112_vm5 }
 0x110   :  { %v107_v41 = vmul.f32 %v1471_v38, %v106_v40  ;;  %v104_v42 = vsel %vm103_vm4, %v1469_v32, %v100_v39  ;;  %v1737_v40 = vperm.slane %v129_v3, 1 }
 0x111   :  { %v115_v45 = vmul.f32 %v104_v42, %v81_v13 }
 0x112   :  { %v108_v43 = vmul.f32 0.5, %v107_v41 }
 0x113   :  { %v120_v50 = vmul.f32 %v1448_v46, %v115_v45 }
 0x114   :  { %v109_v44 = vsub.f32 1.5, %v108_v43 }
 0x115   :  { %v1695_v53 = vadd.f32 %v1449_v51, %v120_v50 }
 0x116   :  { %v110_v47 = vmul.f32 %v1471_v38, %v109_v44 }
 0x118   :  { %v114_v48 = vsel %vm113_vm7, %v1471_v38, %v110_v47  ;;  %vm325_vm7 = vcmask 261248  }
 0x119   :  { %v116_v49 = vmul.f32 %v114_v48, %v82_v18 }
 0x11b   :  { %v121_v52 = vmul.f32 %v1448_v46, %v116_v49 }
 0x11d   :  { %v1697_v54 = vadd.f32 %v1449_v51, %v121_v52 }
 0x11f   :  { %v134_v55 = vpack.c.bf16 %v1697_v54, %v1695_v53 }
 0x121   :  { %1378 = vmatmul.msk.bf16.vlgmr.msra.gmra.mxu0 %vm65_vm0, %v134_v55 }
 0x19e   :  { %v153_v57 = vpop.f32.mrf.mxu0 }
 0x19f   :  { %v154_v58 = vadd.f32 %v1450_v56, %v153_v57 }
 0x1a1   :  { %241 = vrot.lane.b32.xlu0 %v154_v58, %s1559_s19  ;;  %159 = vrot.lane.b32.xlu2 %v154_v58, %s1560_s3 }
 0x1a6   :  { %v155_v59 = vpop.f32.mrf.mxu0 }
 0x1a7   :  { %v1709_v60 = vadd.f32 %v1450_v56, %v155_v59 }
 0x1a9   :  { %214 = vrot.lane.b32.xlu0 %v154_v58, %s1561_s1  ;;  %243 = vrot.lane.b32.xlu2 %v154_v58, %s1562_s20 }
 0x1b1   :  { %410 = vrot.lane.b32.xlu0 %v1709_v60, %s1562_s20 }
 0x1b9   :  { %408 = vrot.lane.b32.xlu0 %v1709_v60, %s1559_s19 }
 0x1fb   :  { %v160_v61 = vpop.permute.xlu2 %159 }
 0x1fc   :  { %1379 = vmatpush.xpose.msk.msrb.mxu0 %vm161_vm8, %v160_v61 }
 0x1ff   :  { %1380 = vmatmul.msk.f32.vlgmr.msrb.gmra.mxu0 %vm161_vm8, %v154_v58 }
 0x203   :  { %v244_v62 = vpop.permute.xlu2 %243 }
 0x204   :  { %1382 = vmatpush.xpose.msk.msra.mxu3 %vm161_vm8, %v244_v62 }
 0x213   :  { %v242_v63 = vpop.permute.xlu0 %241 }
 0x214   :  { %1383 = vmatmul.msk.f32.vlgmr.msra.gmra.mxu3 %vm161_vm8, %v242_v63 }
 0x21b   :  { %v215_v0 = vpop.permute.xlu0 %214 }
 0x21c   :  { %235 = vmatpush.msra.mxu2 %v215_v0 }
 0x223   :  { %v411_v55 = vpop.permute.xlu0 %410 }
 0x27c   :  { %v183_v5 = vpop.f32.mrf.mxu0 }
 0x27d   :  { %v186_v6 = vmul.f32 0.25, %v183_v5 }
 0x27f   :  { %v188_v7 = vadd.f32 %v1722_v4, %v186_v6 }
 0x281   :  { %v190_v8 = vsel %vm189_vm9, %v188_v7, -inf }
 0x282   :  { %191 = vmax.xlane.f32.xlu1 %v190_v8 }
 0x297   :  { %v266_v9 = vpop.f32.mrf.mxu3 }
 0x298   :  { %v269_v11 = vmul.f32 0.25, %v266_v9 }
 0x29a   :  { %v270_v12 = vadd.f32 %v269_v11, %v1722_v4 }
 0x29c   :  { %v271_v13 = vsel %vm189_vm9, %v270_v12, -inf }
 0x29d   :  { %272 = vmax.xlane.f32.xlu2 %v271_v13 }
 0x2b5   :  { %328 = vrot.lane.b32.xlu2 %v1709_v60, %s1560_s3 }
 0x2f5   :  { %v192_v14 = vpop.xlane.xlu1 %191 }
 0x2f6   :  { %v193_v15 = vsub.f32 %v188_v7, %v192_v14 }
 0x2f8   :  { %v194_v16 = vmul.f32 1.442695, %v193_v15 }
 0x2fa   :  { %1472 = vpow2.f32 %v194_v16 }
 0x300   :  { %v1473_v17 = vpop.eup %1472 }
 0x301   :  { %v196_v18 = vsel %vm189_vm9, %v1473_v17, 0.0 }
 0x302   :  { %197 = vadd.xlane.f32.xlu1 %v196_v18 }
 0x310   :  { %v273_v19 = vpop.xlane.xlu2 %272 }
 0x311   :  { %v274_v20 = vsub.f32 %v270_v12, %v273_v19 }
 0x313   :  { %v275_v21 = vmul.f32 1.442695, %v274_v20 }
 0x315   :  { %1474 = vpow2.f32 %v275_v21 }
 0x318   :  { %v329_v22 = vpop.permute.xlu2 %328 }
 0x319   :  { %1385 = vmatpush.xpose.msk.msra.mxu1 %vm161_vm8, %v329_v22 }
 0x31b   :  { %v1475_v23 = vpop.eup %1474 }
 0x31c   :  { %1386 = vmatmul.msk.f32.vlgmr.msra.gmra.mxu1 %vm161_vm8, %v1709_v60  ;;  %v277_v24 = vsel %vm189_vm9, %v1475_v23, 0.0 }
 0x31d   :  { %278 = vadd.xlane.f32.xlu1 %v277_v24 }
 0x336   :  { %295 = vrot.lane.b32.xlu1 %v154_v58, %s1563_s23  ;;  %v409_v58 = vpop.permute.xlu0 %408 }
 0x375   :  { %v198_v25 = vpop.xlane.xlu1 %197 }
 0x376   :  { %1476 = vrcp.f32 %v198_v25  ;;  %v210_v29 = vand.u32 2147483648, %v198_v25  ;;  %v208_v31 = vand.u32 2147483647, %v198_v25  ;;  %vm204_vm11 = vweird.f32 %v198_v25 }
 0x378   :  { %v211_v33 = vor.u32 1.1754944e-38, %v210_v29  ;;  %vm209_vm13 = vcmp.eq.f32.partialorder %v208_v31, 8.507059e+37 }
 0x37c   :  { %v1477_v26 = vpop.eup %1476 }
 0x37d   :  { %v200_v27 = vmul.f32 %v1477_v26, %v198_v25  ;;  %vm205_vm10 = vweird.f32 %v1477_v26 }
 0x37e   :  { %vm206_vm12 = vmor %vm204_vm11, %vm205_vm10 }
 0x37f   :  { %v201_v28 = vsub.f32 1.0, %v200_v27 }
 0x381   :  { %v202_v30 = vmul.f32 %v1477_v26, %v201_v28 }
 0x383   :  { %v203_v32 = vadd.f32 %v1477_v26, %v202_v30 }
 0x385   :  { %v207_v34 = vsel %vm206_vm12, %v1477_v26, %v203_v32 }
 0x386   :  { %v212_v35 = vsel %vm209_vm13, %v211_v33, %v207_v34 }
 0x387   :  { %v213_v36 = vmul.f32 %v1473_v17, %v212_v35 }
 0x389   :  { %1381 = vmatmul.msk.f32.vlgmr.msra.gmra.mxu2 %vm189_vm9, %v213_v36 }
 0x390   :  { %v279_v37 = vpop.xlane.xlu1 %278 }
 0x391   :  { %1478 = vrcp.f32 %v279_v37  ;;  %v291_v48 = vand.u32 2147483648, %v279_v37  ;;  %vm285_vm15 = vweird.f32 %v279_v37  ;;  %v289_v49 = vand.u32 2147483647, %v279_v37 }
 0x393   :  { %v292_v51 = vor.u32 1.1754944e-38, %v291_v48  ;;  %vm290_vm2 = vcmp.eq.f32.partialorder %v289_v49, 8.507059e+37 }
 0x397   :  { %v1479_v38 = vpop.eup %1478 }
 0x398   :  { %v281_v39 = vmul.f32 %v1479_v38, %v279_v37  ;;  %vm286_vm14 = vweird.f32 %v1479_v38 }
 0x399   :  { %v351_v41 = vpop.f32.mrf.mxu1  ;;  %vm287_vm1 = vmor %vm285_vm15, %vm286_vm14 }
 0x39a   :  { %v282_v42 = vsub.f32 1.0, %v281_v39  ;;  %v354_v43 = vmul.f32 0.25, %v351_v41 }
 0x39c   :  { %v283_v44 = vmul.f32 %v1479_v38, %v282_v42  ;;  %v356_v45 = vadd.f32 %v1737_v40, %v354_v43  ;;  %v497_v43 = vld [vmem:[%s2044_s6 + $0x10] sm:$0xff] }
 0x39e   :  { %v284_v46 = vadd.f32 %v1479_v38, %v283_v44  ;;  %v357_v47 = vsel %vm189_vm9, %v356_v45, -inf  ;;  %v498_v44 = vld [vmem:[%s2044_s6 + $0x18] sm:$0xff] }
 0x39f   :  { %358 = vmax.xlane.f32.xlu1 %v357_v47  ;;  %v496_v47 = vld [vmem:[%s2044_s6 + $0x8] sm:$0xff] }
 0x3a0   :  { %v288_v50 = vsel %vm287_vm1, %v1479_v38, %v284_v46  ;;  %v501_v46 = vpack.c.bf16 %v498_v44, %v497_v43 }
 0x3a1   :  { %v293_v52 = vsel %vm290_vm2, %v292_v51, %v288_v50 }
 0x3a2   :  { %v294_v57 = vmul.f32 %v1475_v23, %v293_v52 }
 0x3a8   :  { %v296_v56 = vpop.permute.xlu1 %295 }
 0x3a9   :  { %316 = vmatpush.msrb.mxu2 %v296_v56 }
 0x3aa   :  { %1384 = vmatmul.msk.f32.vlgmr.msrb.gmra.mxu2 %vm189_vm9, %v294_v57 }
 0x3ab   :  { %1388 = vmatpush.xpose.msk.msra.mxu2 %vm161_vm8, %v411_v55  ;;  %v1451_v55 = vld [vmem:[%s2045_s7] ss:$0 sm:$0xff] }
 0x3b2   :  { %1389 = vmatmul.msk.f32.vlgmr.msra.gmra.mxu2 %vm161_vm8, %v409_v58 }
 0x40c   :  { %v237_v59 = vpop.f32.mrf.mxu2 }
 0x40d   :  { %240 = vst.msk [vmem:[#allocation2] sm:$0xff] %vm161_vm8, %v237_v59 }
 0x412   :  { %v359_v61 = vpop.xlane.xlu1 %358 }
 0x413   :  { %v360_v62 = vsub.f32 %v356_v45, %v359_v61  ;;  %v495_v45 = vld [vmem:[%s2044_s6] sm:$0xff] }
 0x414   :  { %v500_v48 = vpack.c.bf16 %v496_v47, %v495_v45  ;;  %v634_v47 = vld [vmem:[%s2050_s12 + $0x38] sm:$0xff] }
 0x415   :  { %v361_v63 = vmul.f32 1.442695, %v360_v62 }
 0x417   :  { %1480 = vpow2.f32 %v361_v63 }
 0x41d   :  { %v1481_v0 = vpop.eup %1480 }
 0x41e   :  { %v363_v1 = vsel %vm189_vm9, %v1481_v0, 0.0 }
 0x41f   :  { %364 = vadd.xlane.f32.xlu1 %v363_v1 }
 0x42d   :  { %v318_v2 = vpop.f32.mrf.mxu2 }
 0x435   :  { %v433_v3 = vpop.f32.mrf.mxu2 }
 0x436   :  { %v436_v5 = vmul.f32 0.25, %v433_v3 }
 0x438   :  { %381 = vrot.lane.b32.xlu1 %v1709_v60, %s1561_s1  ;;  %v437_v6 = vadd.f32 %v436_v5, %v1737_v40 }
 0x43a   :  { %v438_v7 = vsel %vm189_vm9, %v437_v6, -inf }
 0x43b   :  { %439 = vmax.xlane.f32.xlu0 %v438_v7 }
 0x44f   :  { %462 = vrot.lane.b32.xlu0 %v1709_v60, %s1563_s23 }
 0x457   :  { %322 = vrot.lane.b32.xlu0 %v318_v2, %s1564_s24 }
 0x492   :  { %v365_v8 = vpop.xlane.xlu1 %364 }
 0x493   :  { %1482 = vrcp.f32 %v365_v8  ;;  %v377_v15 = vand.u32 2147483648, %v365_v8  ;;  %vm371_vm4 = vweird.f32 %v365_v8  ;;  %v375_v16 = vand.u32 2147483647, %v365_v8 }
 0x495   :  { %v378_v18 = vor.u32 1.1754944e-38, %v377_v15  ;;  %vm376_vm6 = vcmp.eq.f32.partialorder %v375_v16, 8.507059e+37  ;;  %v581_v16 = vld [vmem:[%s2048_s10] sm:$0xff] }
 0x499   :  { %v1483_v9 = vpop.eup %1482 }
 0x49a   :  { %v367_v11 = vmul.f32 %v1483_v9, %v365_v8  ;;  %vm372_vm3 = vweird.f32 %v1483_v9 }
 0x49b   :  { %vm373_vm5 = vmor %vm371_vm4, %vm372_vm3 }
 0x49c   :  { %v368_v12 = vsub.f32 1.0, %v367_v11 }
 0x49e   :  { %v369_v13 = vmul.f32 %v1483_v9, %v368_v12  ;;  %v584_v12 = vld [vmem:[%s2048_s10 + $0x18] sm:$0xff] }
 0x4a0   :  { %v370_v14 = vadd.f32 %v1483_v9, %v369_v13 }
 0x4a2   :  { %v374_v17 = vsel %vm373_vm5, %v1483_v9, %v370_v14  ;;  %vm644_vm5 = vcmask 523264  }
 0x4a3   :  { %v379_v19 = vsel %vm376_vm6, %v378_v18, %v374_v17  ;;  %v582_v17 = vld [vmem:[%s2048_s10 + $0x8] sm:$0xff] }
 0x4a4   :  { %v380_v20 = vmul.f32 %v1481_v0, %v379_v19  ;;  %v586_v19 = vpack.c.bf16 %v582_v17, %v581_v16 }
 0x4aa   :  { %v382_v60 = vpop.permute.xlu1 %381 }
 0x4ab   :  { %402 = vmatpush.msrb.mxu3 %v382_v60 }
 0x4ac   :  { %1387 = vmatmul.msk.f32.vlgmr.msrb.gmra.mxu3 %vm189_vm9, %v380_v20 }
 0x4ad   :  { %515 = vmatpush.bf16.msra.mxu3 %v501_v46  ;;  %v633_v46 = vld [vmem:[%s2050_s12 + $0x30] sm:$0xff] }
 0x4ae   :  { %v440_v21 = vpop.xlane.xlu0 %439 }
 0x4af   :  { %v441_v22 = vsub.f32 %v437_v6, %v440_v21 }
 0x4b1   :  { %v442_v23 = vmul.f32 1.442695, %v441_v22  ;;  %516 = vmatpush.bf16.msra.mxu3 %v500_v48  ;;  %v639_v48 = vpack.c.bf16 %v634_v47, %v633_v46  ;;  %v1395_v46 = vld [vmem:[%s2042_s4 + $0x28] sm:$0xff] }
 0x4b3   :  { %1484 = vpow2.f32 %v442_v23 }
 0x4b9   :  { %v1485_v24 = vpop.eup %1484 }
 0x4ba   :  { %v444_v25 = vsel %vm189_vm9, %v1485_v24, 0.0 }
 0x4bb   :  { %445 = vadd.xlane.f32.xlu2 %v444_v25 }
 0x4c1   :  { %v463_v26 = vpop.permute.xlu0 %462 }
 0x4c2   :  { %483 = vmatpush.msrb.mxu1 %v463_v26 }
 0x4c9   :  { %v323_v27 = vpop.permute.xlu0 %322 }
 0x4ca   :  { %326 = vst.msk [vmem:[#allocation2] sm:$0xff] %vm325_vm7, %v323_v27 }
 0x4d1   :  { %v493_v50 = vld [vmem:[#allocation2] sm:$0xff] }
 0x52e   :  { %v446_v28 = vpop.xlane.xlu2 %445 }
 0x52f   :  { %1486 = vrcp.f32 %v446_v28  ;;  %v404_v29 = vpop.f32.mrf.mxu3  ;;  %v458_v33 = vand.u32 2147483648, %v446_v28  ;;  %v456_v35 = vand.u32 2147483647, %v446_v28  ;;  %vm452_vm11 = vweird.f32 %v446_v28 }
 0x530   :  { %407 = vst.msk [vmem:[#allocation2 + $0x8] sm:$0xff] %vm161_vm8, %v404_v29 }
 0x531   :  { %v459_v37 = vor.u32 1.1754944e-38, %v458_v33  ;;  %vm457_vm13 = vcmp.eq.f32.partialorder %v456_v35, 8.507059e+37 }
 0x535   :  { %v1487_v30 = vpop.eup %1486 }
 0x536   :  { %v448_v31 = vmul.f32 %v1487_v30, %v446_v28  ;;  %vm453_vm10 = vweird.f32 %v1487_v30 }
 0x537   :  { %vm454_vm12 = vmor %vm452_vm11, %vm453_vm10 }
 0x538   :  { %v449_v32 = vsub.f32 1.0, %v448_v31 }
 0x53a   :  { %v450_v34 = vmul.f32 %v1487_v30, %v449_v32 }
 0x53c   :  { %v451_v36 = vadd.f32 %v1487_v30, %v450_v34  ;;  %v1452_v34 = vld [vmem:[%s2046_s8] ss:$0 sm:$0xff] }
 0x53e   :  { %v455_v38 = vsel %vm454_vm12, %v1487_v30, %v451_v36 }
 0x53f   :  { %v460_v39 = vsel %vm457_vm13, %v459_v37, %v455_v38  ;;  %v1453_v38 = vld [vmem:[%s2047_s9] ss:$0 sm:$0xff] }
 0x540   :  { %v461_v41 = vmul.f32 %v1485_v24, %v460_v39 }
 0x542   :  { %1390 = vmatmul.msk.f32.vlgmr.msrb.gmra.mxu1 %vm189_vm9, %v461_v41 }
 0x5bf   :  { %v485_v42 = vpop.f32.mrf.mxu1 }
 0x5c0   :  { %489 = vrot.lane.b32.xlu2 %v485_v42, %s1564_s24 }
 0x61a   :  { %v490_v49 = vpop.permute.xlu2 %489 }
 0x61b   :  { %492 = vst.msk [vmem:[#allocation2 + $0x8] sm:$0xff] %vm325_vm7, %v490_v49  ;;  %v631_v49 = vld [vmem:[%s2050_s12 + $0x20] sm:$0xff] }
 0x622   :  { %v494_v51 = vld [vmem:[#allocation2 + $0x8] sm:$0xff] }
 0x623   :  { %v499_v52 = vpack.c.bf16 %v494_v51, %v493_v50  ;;  %v632_v50 = vld [vmem:[%s2050_s12 + $0x28] sm:$0xff] }
 0x624   :  { %v638_v51 = vpack.c.bf16 %v632_v50, %v631_v49 }
 0x625   :  { %1391 = vmatmul.msk.bf16.vlgmr.msra.gmra.mxu3 %vm65_vm0, %v499_v52  ;;  %v629_v52 = vld [vmem:[%s2050_s12 + $0x10] sm:$0xff] }
 0x6a8   :  { %v518_v56 = vpop.f32.mrf.mxu3 }
 0x6a9   :  { %v519_v57 = vadd.f32 %v1451_v55, %v518_v56 }
 0x6ab   :  { %v523_v58 = vadd.f32 %v519_v57, %v1695_v53  ;;  %v627_v57 = vld [vmem:[%s2050_s12] sm:$0xff] }
 0x6ad   :  { %v527_v59 = vsel %vm65_vm0, %v523_v58, 0.0 }
 0x6ae   :  { %528 = vadd.xlane.f32.xlu0 %v527_v59  ;;  %v1454_v59 = vld [vmem:[%s2049_s11] ss:$0 sm:$0xff] }
 0x6b0   :  { %v520_v61 = vpop.f32.mrf.mxu3 }
 0x6b1   :  { %v521_v62 = vadd.f32 %v1451_v55, %v520_v61  ;;  %v630_v55 = vld [vmem:[%s2050_s12 + $0x18] sm:$0xff] }
 0x6b2   :  { %v637_v56 = vpack.c.bf16 %v630_v55, %v629_v52 }
 0x6b3   :  { %v524_v63 = vadd.f32 %v521_v62, %v1697_v54  ;;  %v583_v54 = vld [vmem:[%s2048_s10 + $0x10] sm:$0xff] }
 0x6b4   :  { %v587_v13 = vpack.c.bf16 %v584_v12, %v583_v54 }
 0x6b5   :  { %v530_v0 = vsel %vm65_vm0, %v524_v63, 0.0 }
 0x6b6   :  { %531 = vadd.xlane.f32.xlu1 %v530_v0  ;;  %601 = vmatpush.bf16.msrb.mxu2 %v587_v13 }
 0x6ba   :  { %602 = vmatpush.bf16.msrb.mxu2 %v586_v19 }
 0x6be   :  { %652 = vmatpush.bf16.msra.mxu2 %v639_v48 }
 0x6c2   :  { %653 = vmatpush.bf16.msra.mxu2 %v638_v51 }
 0x6c6   :  { %654 = vmatpush.bf16.msra.mxu2 %v637_v56 }
 0x721   :  { %v529_v1 = vpop.xlane.xlu0 %528 }
 0x722   :  { %v533_v2 = vmul.f32 %v529_v1, %v1669_v10 }
 0x724   :  { %v535_v3 = vsub.f32 %v523_v58, %v533_v2  ;;  %v628_v58 = vld [vmem:[%s2050_s12 + $0x8] sm:$0xff] }
 0x725   :  { %v636_v61 = vpack.c.bf16 %v628_v58, %v627_v57 }
 0x726   :  { %v537_v5 = vmul.f32 %v535_v3, %v535_v3 }
 0x727   :  { %655 = vmatpush.bf16.msra.mxu2 %v636_v61 }
 0x728   :  { %v539_v6 = vsel %vm65_vm0, %v537_v5, 0.0 }
 0x729   :  { %v532_v7 = vpop.xlane.xlu1 %531  ;;  %540 = vadd.xlane.f32.xlu2 %v539_v6 }
 0x72a   :  { %v534_v53 = vmul.f32 %v532_v7, %v1669_v10 }
 0x72c   :  { %v536_v8 = vsub.f32 %v524_v63, %v534_v53 }
 0x72e   :  { %v538_v9 = vmul.f32 %v536_v8, %v536_v8 }
 0x730   :  { %v542_v11 = vsel %vm65_vm0, %v538_v9, 0.0 }
 0x731   :  { %543 = vadd.xlane.f32.xlu0 %v542_v11 }
 0x79c   :  { %v541_v14 = vpop.xlane.xlu2 %540 }
 0x79d   :  { %v545_v15 = vmul.f32 %v541_v14, %v1669_v10 }
 0x79f   :  { %v547_v18 = vadd.f32 1e-12, %v545_v15 }
 0x7a1   :  { %1488 = vrsqrt.f32 %v547_v18  ;;  %vm555_vm15 = vweird.f32 %v547_v18 }
 0x7a4   :  { %v544_v60 = vpop.xlane.xlu0 %543 }
 0x7a5   :  { %v546_v20 = vmul.f32 %v544_v60, %v1669_v10 }
 0x7a7   :  { %v1489_v21 = vpop.eup %1488  ;;  %v548_v22 = vadd.f32 1e-12, %v546_v20  ;;  %v1455_v20 = vld [vmem:[%s2051_s13] ss:$0 sm:$0xff] }
 0x7a8   :  { %v550_v23 = vmul.f32 %v1489_v21, %v547_v18  ;;  %vm556_vm14 = vweird.f32 %v1489_v21 }
 0x7a9   :  { %1490 = vrsqrt.f32 %v548_v22  ;;  %vm557_vm1 = vmor %vm555_vm15, %vm556_vm14  ;;  %vm565_vm3 = vweird.f32 %v548_v22 }
 0x7aa   :  { %v551_v24 = vmul.f32 %v1489_v21, %v550_v23 }
 0x7ac   :  { %v552_v25 = vmul.f32 0.5, %v551_v24 }
 0x7ae   :  { %v553_v26 = vsub.f32 1.5, %v552_v25 }
 0x7af   :  { %v1491_v27 = vpop.eup %1490 }
 0x7b0   :  { %v554_v28 = vmul.f32 %v1489_v21, %v553_v26  ;;  %v560_v29 = vmul.f32 %v1491_v27, %v548_v22  ;;  %vm566_vm2 = vweird.f32 %v1491_v27 }
 0x7b1   :  { %vm567_vm4 = vmor %vm565_vm3, %vm566_vm2 }
 0x7b2   :  { %v561_v30 = vmul.f32 %v1491_v27, %v560_v29  ;;  %v558_v31 = vsel %vm557_vm1, %v1489_v21, %v554_v28 }
 0x7b3   :  { %v569_v35 = vmul.f32 %v558_v31, %v535_v3 }
 0x7b4   :  { %v562_v32 = vmul.f32 0.5, %v561_v30 }
 0x7b5   :  { %v574_v39 = vmul.f32 %v1452_v34, %v569_v35 }
 0x7b6   :  { %v563_v33 = vsub.f32 1.5, %v562_v32 }
 0x7b7   :  { %v579_v43 = vadd.f32 %v1453_v38, %v574_v39  ;;  %v1396_v39 = vld [vmem:[%s2042_s4 + $0x30] sm:$0xff] }
 0x7b8   :  { %v564_v36 = vmul.f32 %v1491_v27, %v563_v33 }
 0x7ba   :  { %v568_v37 = vsel %vm567_vm4, %v1491_v27, %v564_v36 }
 0x7bb   :  { %v570_v41 = vmul.f32 %v568_v37, %v536_v8 }
 0x7bd   :  { %v575_v42 = vmul.f32 %v1452_v34, %v570_v41  ;;  %v1397_v41 = vld [vmem:[%s2042_s4 + $0x38] sm:$0xff] }
 0x7bf   :  { %v580_v44 = vadd.f32 %v1453_v38, %v575_v42  ;;  %v727_v42 = vpack.c.bf16 %v1397_v41, %v1396_v39 }
 0x7c1   :  { %v585_v45 = vpack.c.bf16 %v580_v44, %v579_v43  ;;  %742 = vmatpush.bf16.msra.mxu1 %v727_v42 }
 0x7c3   :  { %1392 = vmatmul.msk.bf16.vlgmr.msrb.gmra.mxu2 %vm65_vm0, %v585_v45  ;;  %v1394_v45 = vld [vmem:[%s2042_s4 + $0x20] sm:$0xff] }
 0x7c4   :  { %v726_v48 = vpack.c.bf16 %v1395_v46, %v1394_v45 }
 0x7c6   :  { %743 = vmatpush.bf16.msra.mxu1 %v726_v48 }
 0x846   :  { %v604_v62 = vpop.f32.mrf.mxu2 }
 0x847   :  { %v605_v63 = vadd.f32 %v1454_v59, %v604_v62 }
 0x849   :  { %v611_v0 = vmul.f32 0.044715, %v605_v63  ;;  %v609_v15 = vmul.f32 0.5, %v605_v63 }
 0x84b   :  { %v613_v1 = vmul.f32 %v611_v0, %v605_v63 }
 0x84d   :  { %v615_v2 = vmul.f32 %v613_v1, %v605_v63 }
 0x84e   :  { %v606_v3 = vpop.f32.mrf.mxu2 }
 0x84f   :  { %v617_v5 = vadd.f32 %v615_v2, %v605_v63  ;;  %v607_v6 = vadd.f32 %v1454_v59, %v606_v3  ;;  %v1456_v3 = vld [vmem:[%s2052_s14] ss:$0 sm:$0xff] }
 0x851   :  { %v612_v7 = vmul.f32 0.044715, %v607_v6  ;;  %v619_v53 = vmul.f32 0.7978846, %v617_v5  ;;  %v610_v16 = vmul.f32 0.5, %v607_v6 }
 0x853   :  { %v614_v8 = vmul.f32 %v612_v7, %v607_v6  ;;  %1492 = vtanh.f32 %v619_v53  ;;  %v1457_v53 = vld [vmem:[%s2053_s15] ss:$0 sm:$0xff] }
 0x855   :  { %v616_v9 = vmul.f32 %v614_v8, %v607_v6 }
 0x857   :  { %v618_v11 = vadd.f32 %v616_v9, %v607_v6 }
 0x859   :  { %v620_v54 = vmul.f32 0.7978846, %v618_v11  ;;  %v1493_v12 = vpop.eup %1492 }
 0x85a   :  { %v623_v13 = vadd.f32 1.0, %v1493_v12 }
 0x85b   :  { %1494 = vtanh.f32 %v620_v54 }
 0x85c   :  { %v625_v18 = vmul.f32 %v623_v13, %v609_v15 }
 0x861   :  { %v1495_v14 = vpop.eup %1494 }
 0x862   :  { %v624_v17 = vadd.f32 1.0, %v1495_v14  ;;  %v1458_v14 = vld [vmem:[%s2043_s5 + $0x1] ss:$0 sm:$0xff] }
 0x864   :  { %v626_v19 = vmul.f32 %v624_v17, %v610_v16 }
 0x866   :  { %v635_v60 = vpack.c.bf16 %v626_v19, %v625_v18 }
 0x868   :  { %1393 = vmatmul.msk.bf16.vlgmr.msra.gmra.mxu2 %vm644_vm5, %v635_v60 }
 0x8eb   :  { %v657_v21 = vpop.f32.mrf.mxu2 }
 0x8ec   :  { %v658_v22 = vadd.f32 %v1455_v20, %v657_v21 }
 0x8ee   :  { %v662_v23 = vadd.f32 %v658_v22, %v579_v43 }
 0x8f0   :  { %v666_v24 = vsel %vm65_vm0, %v662_v23, 0.0 }
 0x8f1   :  { %667 = vadd.xlane.f32.xlu0 %v666_v24 }
 0x8f3   :  { %v659_v25 = vpop.f32.mrf.mxu2 }
 0x8f4   :  { %v660_v26 = vadd.f32 %v1455_v20, %v659_v25 }
 0x8f6   :  { %v663_v27 = vadd.f32 %v660_v26, %v580_v44 }
 0x8f8   :  { %v669_v28 = vsel %vm65_vm0, %v663_v27, 0.0 }
 0x8f9   :  { %670 = vadd.xlane.f32.xlu1 %v669_v28 }
 0x964   :  { %v668_v29 = vpop.xlane.xlu0 %667 }
 0x965   :  { %v672_v30 = vmul.f32 %v668_v29, %v1669_v10 }
 0x967   :  { %v674_v31 = vsub.f32 %v662_v23, %v672_v30 }
 0x969   :  { %v676_v32 = vmul.f32 %v674_v31, %v674_v31 }
 0x96b   :  { %v678_v33 = vsel %vm65_vm0, %v676_v32, 0.0 }
 0x96c   :  { %v671_v34 = vpop.xlane.xlu1 %670  ;;  %679 = vadd.xlane.f32.xlu2 %v678_v33 }
 0x96d   :  { %v673_v35 = vmul.f32 %v671_v34, %v1669_v10 }
 0x96f   :  { %v675_v36 = vsub.f32 %v663_v27, %v673_v35 }
 0x971   :  { %v677_v37 = vmul.f32 %v675_v36, %v675_v36 }
 0x973   :  { %v681_v38 = vsel %vm65_vm0, %v677_v37, 0.0 }
 0x974   :  { %682 = vadd.xlane.f32.xlu0 %v681_v38 }
 0x9df   :  { %v680_v43 = vpop.xlane.xlu2 %679 }
 0x9e0   :  { %v684_v44 = vmul.f32 %v680_v43, %v1669_v10 }
 0x9e2   :  { %v686_v47 = vadd.f32 1e-12, %v684_v44 }
 0x9e4   :  { %1496 = vrsqrt.f32 %v686_v47  ;;  %vm694_vm10 = vweird.f32 %v686_v47 }
 0x9e7   :  { %v683_v49 = vpop.xlane.xlu0 %682 }
 0x9e8   :  { %v685_v50 = vmul.f32 %v683_v49, %v1669_v10 }
 0x9ea   :  { %v1497_v51 = vpop.eup %1496  ;;  %v687_v52 = vadd.f32 1e-12, %v685_v50 }
 0x9eb   :  { %v689_v55 = vmul.f32 %v1497_v51, %v686_v47  ;;  %vm695_vm6 = vweird.f32 %v1497_v51 }
 0x9ec   :  { %1498 = vrsqrt.f32 %v687_v52  ;;  %vm696_vm11 = vmor %vm694_vm10, %vm695_vm6  ;;  %vm704_vm13 = vweird.f32 %v687_v52 }
 0x9ed   :  { %v690_v56 = vmul.f32 %v1497_v51, %v689_v55 }
 0x9ef   :  { %v691_v57 = vmul.f32 0.5, %v690_v56 }
 0x9f1   :  { %v692_v58 = vsub.f32 1.5, %v691_v57 }
 0x9f2   :  { %v1499_v59 = vpop.eup %1498 }
 0x9f3   :  { %v693_v61 = vmul.f32 %v1497_v51, %v692_v58  ;;  %v699_v62 = vmul.f32 %v1499_v59, %v687_v52  ;;  %vm705_vm12 = vweird.f32 %v1499_v59 }
 0x9f4   :  { %vm706_vm14 = vmor %vm704_vm13, %vm705_vm12 }
 0x9f5   :  { %v700_v63 = vmul.f32 %v1499_v59, %v699_v62  ;;  %v697_v0 = vsel %vm696_vm11, %v1497_v51, %v693_v61 }
 0x9f6   :  { %v708_v5 = vmul.f32 %v697_v0, %v674_v31 }
 0x9f7   :  { %v701_v1 = vmul.f32 0.5, %v700_v63 }
 0x9f8   :  { %v713_v8 = vmul.f32 %v1456_v3, %v708_v5 }
 0x9f9   :  { %v702_v2 = vsub.f32 1.5, %v701_v1 }
 0x9fa   :  { %v1862_v54 = vadd.f32 %v1457_v53, %v713_v8 }
 0x9fb   :  { %v703_v6 = vmul.f32 %v1499_v59, %v702_v2 }
 0x9fd   :  { %v707_v7 = vsel %vm706_vm14, %v1499_v59, %v703_v6 }
 0x9fe   :  { %v709_v9 = vmul.f32 %v707_v7, %v675_v36 }
 0xa00   :  { %v714_v11 = vmul.f32 %v1456_v3, %v709_v9 }
 0xa02   :  { %v1864_v12 = vadd.f32 %v1457_v53, %v714_v11 }
 0xa04   :  { %v725_v13 = vpack.c.bf16 %v1864_v12, %v1862_v54 }
 0xa06   :  { %1399 = vmatmul.msk.bf16.vlgmr.msra.gmra.mxu1 %vm65_vm0, %v725_v13 }
 0xa83   :  { %v745_v15 = vpop.f32.mrf.mxu1 }
 0xa84   :  { %v1872_v16 = vadd.f32 %v1458_v14, %v745_v15 }
 0xa86   :  { %832 = vrot.lane.b32.xlu0 %v1872_v16, %s1562_s20  ;;  %751 = vrot.lane.b32.xlu1 %v1872_v16, %s1560_s3 }
 0xa8b   :  { %v747_v17 = vpop.f32.mrf.mxu1 }
 0xa8c   :  { %v1878_v18 = vadd.f32 %v1458_v14, %v747_v17 }
 0xa8e   :  { %995 = vrot.lane.b32.xlu0 %v1878_v18, %s1559_s19  ;;  %997 = vrot.lane.b32.xlu1 %v1878_v18, %s1562_s20 }
 0xa96   :  { %803 = vrot.lane.b32.xlu0 %v1872_v16, %s1561_s1 }
 0xaf8   :  { %v833_v19 = vpop.permute.xlu0 %832  ;;  %v752_v60 = vpop.permute.xlu1 %751 }
 0xaf9   :  { %1400 = vmatpush.xpose.msk.msrb.mxu3 %vm161_vm8, %v752_v60  ;;  %1403 = vmatpush.xpose.msk.msrb.mxu1 %vm161_vm8, %v833_v19 }
 0xafc   :  { %1401 = vmatmul.msk.f32.vlgmr.msrb.gmra.mxu3 %vm161_vm8, %v1872_v16 }
 0xb00   :  { %v996_v20 = vpop.permute.xlu0 %995  ;;  %v998_v21 = vpop.permute.xlu1 %997 }
 0xb01   :  { %1409 = vmatpush.xpose.msk.msra.mxu1 %vm161_vm8, %v998_v21 }
 0xb08   :  { %v804_v22 = vpop.permute.xlu0 %803 }
 0xb09   :  { %824 = vmatpush.msra.mxu0 %v804_v22 }
 0xb7f   :  { %v774_v23 = vpop.f32.mrf.mxu3 }
 0xb80   :  { %v777_v24 = vmul.f32 0.25, %v774_v23 }
 0xb82   :  { %v778_v25 = vadd.f32 %v777_v24, %v1722_v4 }
 0xb84   :  { %v779_v26 = vsel %vm189_vm9, %v778_v25, -inf }
 0xb85   :  { %780 = vmax.xlane.f32.xlu2 %v779_v26 }
 0xb9d   :  { %830 = vrot.lane.b32.xlu2 %v1872_v16, %s1559_s19 }
 0xba5   :  { %916 = vrot.lane.b32.xlu2 %v1878_v18, %s1560_s3 }
 0xbf8   :  { %v781_v27 = vpop.xlane.xlu2 %780 }
 0xbf9   :  { %v782_v28 = vsub.f32 %v778_v25, %v781_v27 }
 0xbfb   :  { %v783_v29 = vmul.f32 1.442695, %v782_v28 }
 0xbfd   :  { %1500 = vpow2.f32 %v783_v29 }
 0xc00   :  { %v831_v30 = vpop.permute.xlu2 %830 }
 0xc01   :  { %1404 = vmatmul.msk.f32.vlgmr.msrb.gmra.mxu1 %vm161_vm8, %v831_v30 }
 0xc03   :  { %v1501_v31 = vpop.eup %1500 }
 0xc04   :  { %v785_v32 = vsel %vm189_vm9, %v1501_v31, 0.0 }
 0xc05   :  { %786 = vadd.xlane.f32.xlu1 %v785_v32 }
 0xc08   :  { %v917_v33 = vpop.permute.xlu2 %916 }
 0xc09   :  { %1406 = vmatpush.xpose.msk.msrb.mxu0 %vm161_vm8, %v917_v33  ;;  %1410 = vmatmul.msk.f32.vlgmr.msra.gmra.mxu1 %vm161_vm8, %v996_v20 }
 0xc78   :  { %v787_v34 = vpop.xlane.xlu1 %786 }
 0xc79   :  { %1502 = vrcp.f32 %v787_v34  ;;  %v799_v42 = vand.u32 2147483648, %v787_v34  ;;  %v797_v45 = vand.u32 2147483647, %v787_v34  ;;  %vm793_vm1 = vweird.f32 %v787_v34 }
 0xc7b   :  { %v800_v48 = vor.u32 1.1754944e-38, %v799_v42  ;;  %vm798_vm3 = vcmp.eq.f32.partialorder %v797_v45, 8.507059e+37 }
 0xc7e   :  { %v855_v35 = vpop.f32.mrf.mxu1 }
 0xc7f   :  { %v1503_v36 = vpop.eup %1502  ;;  %v858_v37 = vmul.f32 0.25, %v855_v35 }
 0xc80   :  { %v789_v38 = vmul.f32 %v1503_v36, %v787_v34  ;;  %vm794_vm15 = vweird.f32 %v1503_v36 }
 0xc81   :  { %v859_v39 = vadd.f32 %v858_v37, %v1722_v4  ;;  %vm795_vm2 = vmor %vm793_vm1, %vm794_vm15 }
 0xc82   :  { %v790_v41 = vsub.f32 1.0, %v789_v38 }
 0xc83   :  { %v860_v43 = vsel %vm189_vm9, %v859_v39, -inf }
 0xc84   :  { %v791_v44 = vmul.f32 %v1503_v36, %v790_v41  ;;  %861 = vmax.xlane.f32.xlu0 %v860_v43 }
 0xc86   :  { %v792_v46 = vadd.f32 %v1503_v36, %v791_v44  ;;  %v1020_v47 = vpop.f32.mrf.mxu1 }
 0xc87   :  { %v1023_v49 = vmul.f32 0.25, %v1020_v47 }
 0xc88   :  { %v796_v50 = vsel %vm795_vm2, %v1503_v36, %v792_v46 }
 0xc89   :  { %v801_v51 = vsel %vm798_vm3, %v800_v48, %v796_v50  ;;  %v1024_v52 = vadd.f32 %v1023_v49, %v1737_v40 }
 0xc8a   :  { %v802_v4 = vmul.f32 %v1501_v31, %v801_v51 }
 0xc8b   :  { %v1025_v55 = vsel %vm189_vm9, %v1024_v52, -inf }
 0xc8c   :  { %1026 = vmax.xlane.f32.xlu2 %v1025_v55  ;;  %1402 = vmatmul.msk.f32.vlgmr.msra.gmra.mxu0 %vm189_vm9, %v802_v4 }
 0xc94   :  { %1407 = vmatmul.msk.f32.vlgmr.msrb.gmra.mxu0 %vm161_vm8, %v1878_v18 }
 0xca4   :  { %884 = vrot.lane.b32.xlu2 %v1872_v16, %s1563_s23 }
 0xcf7   :  { %v862_v56 = vpop.xlane.xlu0 %861 }
 0xcf8   :  { %v863_v57 = vsub.f32 %v859_v39, %v862_v56 }
 0xcfa   :  { %v864_v58 = vmul.f32 1.442695, %v863_v57  ;;  %v1414_v57 = vld [vmem:[%s2044_s6 + $0x30] sm:$0xff] }
 0xcfc   :  { %1504 = vpow2.f32 %v864_v58  ;;  %v1415_v58 = vld [vmem:[%s2044_s6 + $0x38] sm:$0xff] }
 0xcff   :  { %v1027_v59 = vpop.xlane.xlu2 %1026 }
 0xd00   :  { %v1028_v61 = vsub.f32 %v1024_v52, %v1027_v59  ;;  %v1412_v59 = vld [vmem:[%s2044_s6 + $0x20] sm:$0xff] }
 0xd02   :  { %v1505_v62 = vpop.eup %1504  ;;  %v1029_v63 = vmul.f32 1.442695, %v1028_v61  ;;  %v1089_v61 = vpack.c.bf16 %v1415_v58, %v1414_v57 }
 0xd03   :  { %v866_v0 = vsel %vm189_vm9, %v1505_v62, 0.0 }
 0xd04   :  { %1506 = vpow2.f32 %v1029_v63  ;;  %867 = vadd.xlane.f32.xlu1 %v866_v0  ;;  %1104 = vmatpush.bf16.msra.mxu0 %v1089_v61  ;;  %v1433_v61 = vld [vmem:[%s2050_s12 + $0x78] sm:$0xff] }
 0xd07   :  { %v885_v1 = vpop.permute.xlu2 %884 }
 0xd08   :  { %905 = vmatpush.msra.mxu3 %v885_v1 }
 0xd09   :  { %v826_v2 = vpop.f32.mrf.mxu0 }
 0xd0a   :  { %v1507_v3 = vpop.eup %1506  ;;  %829 = vst.msk [vmem:[#allocation2] sm:$0xff] %vm161_vm8, %v826_v2 }
 0xd0b   :  { %v1031_v5 = vsel %vm189_vm9, %v1507_v3, 0.0 }
 0xd0c   :  { %1032 = vadd.xlane.f32.xlu0 %v1031_v5 }
 0xd11   :  { %v939_v6 = vpop.f32.mrf.mxu0 }
 0xd12   :  { %v942_v7 = vmul.f32 0.25, %v939_v6  ;;  %v1459_v6 = vld [vmem:[%s2045_s7 + $0x1] ss:$0 sm:$0xff] }
 0xd14   :  { %v943_v53 = vadd.f32 %v942_v7, %v1737_v40 }
 0xd16   :  { %v944_v8 = vsel %vm189_vm9, %v943_v53, -inf }
 0xd17   :  { %945 = vmax.xlane.f32.xlu1 %v944_v8 }
 0xd30   :  { %1049 = vrot.lane.b32.xlu1 %v1878_v18, %s1563_s23 }
 0xd77   :  { %v868_v9 = vpop.xlane.xlu1 %867 }
 0xd78   :  { %1508 = vrcp.f32 %v868_v9  ;;  %v880_v16 = vand.u32 2147483648, %v868_v9  ;;  %v878_v19 = vand.u32 2147483647, %v868_v9  ;;  %vm874_vm6 = vweird.f32 %v868_v9 }
 0xd7a   :  { %v881_v40 = vor.u32 1.1754944e-38, %v880_v16  ;;  %vm879_vm11 = vcmp.eq.f32.partialorder %v878_v19, 8.507059e+37 }
 0xd7e   :  { %v1509_v11 = vpop.eup %1508 }
 0xd7f   :  { %v870_v13 = vmul.f32 %v1509_v11, %v868_v9  ;;  %v1033_v14 = vpop.xlane.xlu0 %1032  ;;  %vm875_vm4 = vweird.f32 %v1509_v11 }
 0xd80   :  { %1510 = vrcp.f32 %v1033_v14  ;;  %vm876_vm10 = vmor %vm874_vm6, %vm875_vm4  ;;  %v1045_v33 = vand.u32 2147483648, %v1033_v14  ;;  %vm1039_vm13 = vweird.f32 %v1033_v14  ;;  %v1043_v34 = vand.u32 2147483647, %v1033_v14 }
 0xd81   :  { %v871_v15 = vsub.f32 1.0, %v870_v13 }
 0xd82   :  { %v1046_v36 = vor.u32 1.1754944e-38, %v1045_v33  ;;  %vm1044_vm15 = vcmp.eq.f32.partialorder %v1043_v34, 8.507059e+37 }
 0xd83   :  { %v872_v17 = vmul.f32 %v1509_v11, %v871_v15 }
 0xd85   :  { %v873_v60 = vadd.f32 %v1509_v11, %v872_v17 }
 0xd86   :  { %v1511_v22 = vpop.eup %1510 }
 0xd87   :  { %v877_v20 = vsel %vm876_vm10, %v1509_v11, %v873_v60  ;;  %v1035_v26 = vmul.f32 %v1511_v22, %v1033_v14  ;;  %vm1040_vm12 = vweird.f32 %v1511_v22 }
 0xd88   :  { %v882_v21 = vsel %vm879_vm11, %v881_v40, %v877_v20  ;;  %vm1041_vm14 = vmor %vm1039_vm13, %vm1040_vm12 }
 0xd89   :  { %v883_v23 = vmul.f32 %v1505_v62, %v882_v21  ;;  %v1036_v28 = vsub.f32 1.0, %v1035_v26  ;;  %v1413_v62 = vld [vmem:[%s2044_s6 + $0x28] sm:$0xff] }
 0xd8a   :  { %v946_v24 = vpop.xlane.xlu1 %945  ;;  %v1088_v63 = vpack.c.bf16 %v1413_v62, %v1412_v59  ;;  %v1432_v59 = vld [vmem:[%s2050_s12 + $0x70] sm:$0xff] }
 0xd8b   :  { %v947_v25 = vsub.f32 %v943_v53, %v946_v24  ;;  %1405 = vmatmul.msk.f32.vlgmr.msra.gmra.mxu3 %vm189_vm9, %v883_v23  ;;  %v1037_v29 = vmul.f32 %v1511_v22, %v1036_v28  ;;  %v1423_v24 = vld [vmem:[%s2048_s10 + $0x38] sm:$0xff]  ;;  %v1420_v28 = vld [vmem:[%s2048_s10 + $0x20] sm:$0xff]  ;;  %v1233_v62 = vpack.c.bf16 %v1433_v61, %v1432_v59 }
 0xd8c   :  { %1105 = vmatpush.bf16.msra.mxu0 %v1088_v63  ;;  %v1430_v63 = vld [vmem:[%s2050_s12 + $0x60] sm:$0xff] }
 0xd8d   :  { %v948_v27 = vmul.f32 1.442695, %v947_v25  ;;  %v1038_v32 = vadd.f32 %v1511_v22, %v1037_v29  ;;  %v1421_v29 = vld [vmem:[%s2048_s10 + $0x28] sm:$0xff]  ;;  %1246 = vmatpush.bf16.msrb.mxu1 %v1233_v62 }
 0xd8f   :  { %1512 = vpow2.f32 %v948_v27  ;;  %v1042_v35 = vsel %vm1041_vm14, %v1511_v22, %v1038_v32 }
 0xd90   :  { %v1047_v37 = vsel %vm1044_vm15, %v1046_v36, %v1042_v35 }
 0xd91   :  { %v1048_v39 = vmul.f32 %v1507_v3, %v1047_v37 }
 0xd95   :  { %v1513_v30 = vpop.eup %1512 }
 0xd96   :  { %v950_v31 = vsel %vm189_vm9, %v1513_v30, 0.0 }
 0xd97   :  { %951 = vadd.xlane.f32.xlu0 %v950_v31  ;;  %v1178_v31 = vpack.c.bf16 %v1421_v29, %v1420_v28 }
 0xda2   :  { %v1050_v38 = vpop.permute.xlu1 %1049 }
 0xda3   :  { %1070 = vmatpush.msrb.mxu3 %v1050_v38 }
 0xda4   :  { %1411 = vmatmul.msk.f32.vlgmr.msrb.gmra.mxu3 %vm189_vm9, %v1048_v39 }
 0xdab   :  { %968 = vrot.lane.b32.xlu0 %v1878_v18, %s1561_s1 }
 0xe0a   :  { %v952_v41 = vpop.xlane.xlu0 %951 }
 0xe0b   :  { %1514 = vrcp.f32 %v952_v41  ;;  %v964_v46 = vand.u32 2147483648, %v952_v41  ;;  %v962_v48 = vand.u32 2147483647, %v952_v41  ;;  %vm958_vm2 = vweird.f32 %v952_v41 }
 0xe0d   :  { %v965_v50 = vor.u32 1.1754944e-38, %v964_v46  ;;  %vm963_vm4 = vcmp.eq.f32.partialorder %v962_v48, 8.507059e+37  ;;  %v1460_v48 = vld [vmem:[%s2046_s8 + $0x1] ss:$0 sm:$0xff] }
 0xe0e   :  { %v907_v42 = vpop.f32.mrf.mxu3 }
 0xe0f   :  { %911 = vrot.lane.b32.xlu2 %v907_v42, %s1564_s24 }
 0xe11   :  { %v1515_v43 = vpop.eup %1514 }
 0xe12   :  { %v954_v44 = vmul.f32 %v1515_v43, %v952_v41  ;;  %vm959_vm1 = vweird.f32 %v1515_v43 }
 0xe13   :  { %vm960_vm3 = vmor %vm958_vm2, %vm959_vm1  ;;  %vm1341_vm2 = vcmask 253952  }
 0xe14   :  { %v955_v45 = vsub.f32 1.0, %v954_v44 }
 0xe16   :  { %v956_v47 = vmul.f32 %v1515_v43, %v955_v45 }
 0xe18   :  { %v957_v49 = vadd.f32 %v1515_v43, %v956_v47 }
 0xe1a   :  { %v961_v51 = vsel %vm960_vm3, %v1515_v43, %v957_v49 }
 0xe1b   :  { %v966_v52 = vsel %vm963_vm4, %v965_v50, %v961_v51 }
 0xe1c   :  { %v967_v18 = vmul.f32 %v1513_v30, %v966_v52  ;;  %v1461_v52 = vld [vmem:[%s2047_s9 + $0x1] ss:$0 sm:$0xff]  ;;  %s1565_s9 = smov [#allocation3]  }
 0xe1d   :  { %v969_v4 = vpop.permute.xlu0 %968  ;;  %s1367_s23 = sshll.u32 %s1565_s9, 4  ;;  %s1368_s23 = int_to_ptr.vmem [resolvable:$true] %s1367_s23 }
 0xe1e   :  { %989 = vmatpush.msrb.mxu2 %v969_v4 }
 0xe1f   :  { %1408 = vmatmul.msk.f32.vlgmr.msrb.gmra.mxu2 %vm189_vm9, %v967_v18 }
 0xe27   :  { %v1072_v55 = vpop.f32.mrf.mxu3 }
 0xe28   :  { %1076 = vrot.lane.b32.xlu1 %v1072_v55, %s1564_s24  ;;  %s1369_s24 = sshll.u32 %s2056_s18, 4  ;;  %s1370_s24 = int_to_ptr.hbm [resolvable:$true] %s1369_s24 }
 0xe69   :  { %v912_v56 = vpop.permute.xlu2 %911 }
 0xe6a   :  { %914 = vst.msk [vmem:[#allocation2] sm:$0xff] %vm325_vm7, %v912_v56 }
 0xe71   :  { %v1080_v2 = vld [vmem:[#allocation2] sm:$0xff] }
 0xe9a   :  { %v1077_v1 = vpop.permute.xlu1 %1076 }
 0xea2   :  { %v991_v0 = vpop.f32.mrf.mxu2 }
 0xea3   :  { %994 = vst.msk [vmem:[#allocation2 + $0x8] sm:$0xff] %vm161_vm8, %v991_v0  ;;  %v1431_v0 = vld [vmem:[%s2050_s12 + $0x68] sm:$0xff] }
 0xea4   :  { %1079 = vst.msk [vmem:[#allocation2 + $0x8] sm:$0xff] %vm325_vm7, %v1077_v1  ;;  %v1232_v1 = vpack.c.bf16 %v1431_v0, %v1430_v63 }
 0xea6   :  { %1247 = vmatpush.bf16.msrb.mxu1 %v1232_v1 }
 0xeab   :  { %v1081_v3 = vld [vmem:[#allocation2 + $0x8] sm:$0xff] }
 0xeac   :  { %v1087_v5 = vpack.c.bf16 %v1081_v3, %v1080_v2  ;;  %v1428_v2 = vld [vmem:[%s2050_s12 + $0x50] sm:$0xff]  ;;  %v1429_v3 = vld [vmem:[%s2050_s12 + $0x58] sm:$0xff] }
 0xeae   :  { %1417 = vmatmul.msk.bf16.vlgmr.msra.gmra.mxu0 %vm65_vm0, %v1087_v5  ;;  %v1231_v5 = vpack.c.bf16 %v1429_v3, %v1428_v2 }
 0xeb0   :  { %1248 = vmatpush.bf16.msrb.mxu1 %v1231_v5 }
 0xf2b   :  { %v1107_v7 = vpop.f32.mrf.mxu0 }
 0xf2c   :  { %v1108_v53 = vadd.f32 %v1459_v6, %v1107_v7  ;;  %v1427_v7 = vld [vmem:[%s2050_s12 + $0x48] sm:$0xff] }
 0xf2e   :  { %v1112_v8 = vadd.f32 %v1108_v53, %v1862_v54  ;;  %v1462_v53 = vld [vmem:[%s2049_s11 + $0x1] ss:$0 sm:$0xff] }
 0xf30   :  { %v1118_v9 = vsel %vm65_vm0, %v1112_v8, 0.0 }
 0xf31   :  { %1119 = vadd.xlane.f32.xlu2 %v1118_v9 }
 0xf33   :  { %v1109_v11 = vpop.f32.mrf.mxu0 }
 0xf34   :  { %v1110_v13 = vadd.f32 %v1459_v6, %v1109_v11  ;;  %v1426_v6 = vld [vmem:[%s2050_s12 + $0x40] sm:$0xff] }
 0xf36   :  { %v1113_v14 = vadd.f32 %v1110_v13, %v1864_v12  ;;  %v1422_v12 = vld [vmem:[%s2048_s10 + $0x30] sm:$0xff] }
 0xf37   :  { %v1179_v25 = vpack.c.bf16 %v1423_v24, %v1422_v12 }
 0xf38   :  { %v1121_v15 = vsel %vm65_vm0, %v1113_v14, 0.0 }
 0xf39   :  { %1122 = vadd.xlane.f32.xlu0 %v1121_v15  ;;  %1194 = vmatpush.bf16.msra.mxu2 %v1179_v25 }
 0xf3d   :  { %1195 = vmatpush.bf16.msra.mxu2 %v1178_v31  ;;  %v1463_v31 = vld [vmem:[%s2051_s13 + $0x1] ss:$0 sm:$0xff] }
 0xfa4   :  { %v1120_v16 = vpop.xlane.xlu2 %1119 }
 0xfa5   :  { %v1124_v17 = vmul.f32 %v1120_v16, %v1669_v10 }
 0xfa7   :  { %v1126_v19 = vsub.f32 %v1112_v8, %v1124_v17  ;;  %v1230_v8 = vpack.c.bf16 %v1427_v7, %v1426_v6 }
 0xfa9   :  { %v1128_v60 = vmul.f32 %v1126_v19, %v1126_v19  ;;  %1249 = vmatpush.bf16.msrb.mxu1 %v1230_v8  ;;  %v1464_v8 = vld [vmem:[%s2052_s14 + $0x1] ss:$0 sm:$0xff] }
 0xfab   :  { %v1130_v40 = vsel %vm65_vm0, %v1128_v60, 0.0 }
 0xfac   :  { %v1123_v20 = vpop.xlane.xlu0 %1122  ;;  %1131 = vadd.xlane.f32.xlu1 %v1130_v40 }
 0xfad   :  { %v1125_v54 = vmul.f32 %v1123_v20, %v1669_v10 }
 0xfaf   :  { %v1127_v21 = vsub.f32 %v1113_v14, %v1125_v54 }
 0xfb1   :  { %v1129_v22 = vmul.f32 %v1127_v21, %v1127_v21 }
 0xfb3   :  { %v1133_v23 = vsel %vm65_vm0, %v1129_v22, 0.0 }
 0xfb4   :  { %1134 = vadd.xlane.f32.xlu2 %v1133_v23 }
0x101f   :  { %v1132_v26 = vpop.xlane.xlu1 %1131 }
0x1020   :  { %v1136_v27 = vmul.f32 %v1132_v26, %v1669_v10 }
0x1022   :  { %v1138_v30 = vadd.f32 1e-12, %v1136_v27 }
0x1024   :  { %1516 = vrsqrt.f32 %v1138_v30  ;;  %vm1146_vm9 = vweird.f32 %v1138_v30 }
0x1027   :  { %v1135_v32 = vpop.xlane.xlu2 %1134 }
0x1028   :  { %v1137_v33 = vmul.f32 %v1135_v32, %v1669_v10 }
0x102a   :  { %v1517_v34 = vpop.eup %1516  ;;  %v1139_v35 = vadd.f32 1e-12, %v1137_v33 }
0x102b   :  { %v1141_v36 = vmul.f32 %v1517_v34, %v1138_v30  ;;  %vm1147_vm8 = vweird.f32 %v1517_v34 }
0x102c   :  { %1518 = vrsqrt.f32 %v1139_v35  ;;  %vm1148_vm7 = vmor %vm1146_vm9, %vm1147_vm8  ;;  %vm1156_vm10 = vweird.f32 %v1139_v35 }
0x102d   :  { %v1142_v37 = vmul.f32 %v1517_v34, %v1141_v36 }
0x102f   :  { %v1143_v38 = vmul.f32 0.5, %v1142_v37 }
0x1031   :  { %v1144_v39 = vsub.f32 1.5, %v1143_v38 }
0x1032   :  { %v1519_v41 = vpop.eup %1518 }
0x1033   :  { %v1145_v42 = vmul.f32 %v1517_v34, %v1144_v39  ;;  %v1151_v43 = vmul.f32 %v1519_v41, %v1139_v35  ;;  %vm1157_vm6 = vweird.f32 %v1519_v41 }
0x1034   :  { %vm1158_vm11 = vmor %vm1156_vm10, %vm1157_vm6 }
0x1035   :  { %v1152_v44 = vmul.f32 %v1519_v41, %v1151_v43  ;;  %v1149_v45 = vsel %vm1148_vm7, %v1517_v34, %v1145_v42 }
0x1036   :  { %v1160_v49 = vmul.f32 %v1149_v45, %v1126_v19 }
0x1037   :  { %v1153_v46 = vmul.f32 0.5, %v1152_v44 }
0x1038   :  { %v1165_v18 = vmul.f32 %v1460_v48, %v1160_v49 }
0x1039   :  { %v1154_v47 = vsub.f32 1.5, %v1153_v46 }
0x103a   :  { %v1170_v56 = vadd.f32 %v1461_v52, %v1165_v18 }
0x103b   :  { %v1155_v50 = vmul.f32 %v1519_v41, %v1154_v47 }
0x103d   :  { %v1159_v51 = vsel %vm1158_vm11, %v1519_v41, %v1155_v50 }
0x103e   :  { %v1161_v4 = vmul.f32 %v1159_v51, %v1127_v21  ;;  %v1318_v51 = vld [vmem:[%s2054_s16 + $0x10] sm:$0xff] }
0x1040   :  { %v1166_v55 = vmul.f32 %v1460_v48, %v1161_v4  ;;  %v1316_v4 = vld [vmem:[%s2054_s16] sm:$0xff] }
0x1042   :  { %v1171_v57 = vadd.f32 %v1461_v52, %v1166_v55  ;;  %v1319_v52 = vld [vmem:[%s2054_s16 + $0x18] sm:$0xff]  ;;  %v1317_v55 = vld [vmem:[%s2054_s16 + $0x8] sm:$0xff] }
0x1043   :  { %v1323_v18 = vpack.c.bf16 %v1319_v52, %v1318_v51 }
0x1044   :  { %v1177_v58 = vpack.c.bf16 %v1171_v57, %v1170_v56 }
0x1045   :  { %1333 = vmatpush.bf16.msra.mxu3 %v1323_v18  ;;  %1353 = vmatpush.bf16.msrb.mxu0 %v1323_v18 }
0x1046   :  { %1425 = vmatmul.msk.bf16.vlgmr.msra.gmra.mxu2 %vm65_vm0, %v1177_v58 }
0x10c9   :  { %v1197_v9 = vpop.f32.mrf.mxu2 }
0x10ca   :  { %v1198_v11 = vadd.f32 %v1462_v53, %v1197_v9 }
0x10cc   :  { %v1204_v13 = vmul.f32 0.044715, %v1198_v11  ;;  %v1202_v25 = vmul.f32 0.5, %v1198_v11 }
0x10ce   :  { %v1206_v14 = vmul.f32 %v1204_v13, %v1198_v11  ;;  %v1465_v13 = vld [vmem:[%s2053_s15 + $0x1] ss:$0 sm:$0xff] }
0x10d0   :  { %v1208_v15 = vmul.f32 %v1206_v14, %v1198_v11 }
0x10d1   :  { %v1199_v16 = vpop.f32.mrf.mxu2 }
0x10d2   :  { %v1210_v17 = vadd.f32 %v1208_v15, %v1198_v11  ;;  %v1200_v19 = vadd.f32 %v1462_v53, %v1199_v16 }
0x10d4   :  { %v1205_v60 = vmul.f32 0.044715, %v1200_v19  ;;  %v1212_v40 = vmul.f32 0.7978846, %v1210_v17  ;;  %v1203_v26 = vmul.f32 0.5, %v1200_v19 }
0x10d6   :  { %v1207_v20 = vmul.f32 %v1205_v60, %v1200_v19  ;;  %1520 = vtanh.f32 %v1212_v40 }
0x10d8   :  { %v1209_v54 = vmul.f32 %v1207_v20, %v1200_v19 }
0x10da   :  { %v1211_v21 = vadd.f32 %v1209_v54, %v1200_v19 }
0x10dc   :  { %v1213_v22 = vmul.f32 0.7978846, %v1211_v21  ;;  %v1521_v23 = vpop.eup %1520 }
0x10dd   :  { %v1216_v12 = vadd.f32 1.0, %v1521_v23  ;;  %v1320_v23 = vld [vmem:[%s2055_s17] sm:$0x1] }
0x10de   :  { %1522 = vtanh.f32 %v1213_v22 }
0x10df   :  { %v1218_v28 = vmul.f32 %v1216_v12, %v1202_v25 }
0x10e4   :  { %v1523_v24 = vpop.eup %1522 }
0x10e5   :  { %v1217_v27 = vadd.f32 1.0, %v1523_v24 }
0x10e7   :  { %v1219_v29 = vmul.f32 %v1217_v27, %v1203_v26 }
0x10e9   :  { %v1229_v30 = vpack.c.bf16 %v1219_v29, %v1218_v28 }
0x10eb   :  { %1435 = vmatmul.msk.bf16.vlgmr.msrb.gmra.mxu1 %vm644_vm5, %v1229_v30 }
0x1168   :  { %v1251_v32 = vpop.f32.mrf.mxu1 }
0x1169   :  { %v1252_v33 = vadd.f32 %v1463_v31, %v1251_v32 }
0x116b   :  { %v1256_v34 = vadd.f32 %v1252_v33, %v1170_v56  ;;  %v1322_v56 = vpack.c.bf16 %v1317_v55, %v1316_v4 }
0x116d   :  { %v1262_v35 = vsel %vm65_vm0, %v1256_v34, 0.0  ;;  %1334 = vmatpush.bf16.msra.mxu3 %v1322_v56  ;;  %1354 = vmatpush.bf16.msrb.mxu0 %v1322_v56 }
0x116e   :  { %1263 = vadd.xlane.f32.xlu0 %v1262_v35 }
0x1170   :  { %v1253_v36 = vpop.f32.mrf.mxu1 }
0x1171   :  { %v1254_v37 = vadd.f32 %v1463_v31, %v1253_v36 }
0x1173   :  { %v1257_v38 = vadd.f32 %v1254_v37, %v1171_v57 }
0x1175   :  { %v1265_v39 = vsel %vm65_vm0, %v1257_v38, 0.0 }
0x1176   :  { %1266 = vadd.xlane.f32.xlu1 %v1265_v39 }
0x11e1   :  { %v1264_v41 = vpop.xlane.xlu0 %1263 }
0x11e2   :  { %v1268_v42 = vmul.f32 %v1264_v41, %v1669_v10 }
0x11e4   :  { %v1270_v43 = vsub.f32 %v1256_v34, %v1268_v42 }
0x11e6   :  { %v1272_v44 = vmul.f32 %v1270_v43, %v1270_v43 }
0x11e8   :  { %v1274_v45 = vsel %vm65_vm0, %v1272_v44, 0.0 }
0x11e9   :  { %v1267_v46 = vpop.xlane.xlu1 %1266  ;;  %1275 = vadd.xlane.f32.xlu2 %v1274_v45 }
0x11ea   :  { %v1269_v47 = vmul.f32 %v1267_v46, %v1669_v10 }
0x11ec   :  { %v1271_v48 = vsub.f32 %v1257_v38, %v1269_v47 }
0x11ee   :  { %v1273_v49 = vmul.f32 %v1271_v48, %v1271_v48 }
0x11f0   :  { %v1277_v50 = vsel %vm65_vm0, %v1273_v49, 0.0 }
0x11f1   :  { %1278 = vadd.xlane.f32.xlu0 %v1277_v50 }
0x125c   :  { %v1276_v57 = vpop.xlane.xlu2 %1275 }
0x125d   :  { %v1280_v58 = vmul.f32 %v1276_v57, %v1669_v10 }
0x125f   :  { %v1282_v59 = vadd.f32 1e-12, %v1280_v58 }
0x1261   :  { %1524 = vrsqrt.f32 %v1282_v59  ;;  %vm1290_vm12 = vweird.f32 %v1282_v59 }
0x1264   :  { %v1279_v61 = vpop.xlane.xlu0 %1278 }
0x1265   :  { %v1281_v62 = vmul.f32 %v1279_v61, %v1669_v10 }
0x1267   :  { %v1525_v63 = vpop.eup %1524  ;;  %v1283_v0 = vadd.f32 1e-12, %v1281_v62 }
0x1268   :  { %v1285_v1 = vmul.f32 %v1525_v63, %v1282_v59  ;;  %vm1291_vm5 = vweird.f32 %v1525_v63 }
0x1269   :  { %1526 = vrsqrt.f32 %v1283_v0  ;;  %vm1292_vm13 = vmor %vm1290_vm12, %vm1291_vm5  ;;  %vm1300_vm15 = vweird.f32 %v1283_v0 }
0x126a   :  { %v1286_v2 = vmul.f32 %v1525_v63, %v1285_v1 }
0x126c   :  { %v1287_v3 = vmul.f32 0.5, %v1286_v2 }
0x126e   :  { %v1288_v5 = vsub.f32 1.5, %v1287_v3 }
0x126f   :  { %v1527_v6 = vpop.eup %1526 }
0x1270   :  { %v1289_v7 = vmul.f32 %v1525_v63, %v1288_v5  ;;  %v1295_v53 = vmul.f32 %v1527_v6, %v1283_v0  ;;  %vm1301_vm14 = vweird.f32 %v1527_v6 }
0x1271   :  { %vm1302_vm1 = vmor %vm1300_vm15, %vm1301_vm14 }
0x1272   :  { %v1293_v9 = vsel %vm1292_vm13, %v1525_v63, %v1289_v7  ;;  %v1296_v11 = vmul.f32 %v1527_v6, %v1295_v53 }
0x1273   :  { %v1304_v10 = vmul.f32 %v1293_v9, %v1270_v43 }
0x1274   :  { %v1297_v14 = vmul.f32 0.5, %v1296_v11 }
0x1275   :  { %v1309_v15 = vmul.f32 %v1464_v8, %v1304_v10 }
0x1276   :  { %v1298_v16 = vsub.f32 1.5, %v1297_v14 }
0x1277   :  { %v1314_v17 = vadd.f32 %v1465_v13, %v1309_v15 }
0x1278   :  { %v1299_v19 = vmul.f32 %v1527_v6, %v1298_v16 }
0x1279   :  { %v1321_v60 = vpack.c.bf16 %v1314_v17, %v1314_v17 }
0x127a   :  { %v1303_v40 = vsel %vm1302_vm1, %v1527_v6, %v1299_v19 }
0x127b   :  { %v1305_v20 = vmul.f32 %v1303_v40, %v1271_v48  ;;  %1438 = vmatmul.msk.bf16.vlgmr.msra.gmra.mxu3 %vm65_vm0, %v1321_v60 }
0x127d   :  { %v1310_v54 = vmul.f32 %v1464_v8, %v1305_v20 }
0x127f   :  { %v1315_v21 = vadd.f32 %v1465_v13, %v1310_v54 }
0x1281   :  { %v1343_v22 = vpack.c.bf16 %v1315_v21, %v1315_v21 }
0x1283   :  { %1439 = vmatmul.msk.bf16.vlgmr.msrb.gmra.mxu0 %vm65_vm0, %v1343_v22 }
0x12fe   :  { %v1336_v12 = vpop.f32.mrf.mxu3 }
0x12ff   :  { %v1337_v24 = vadd.f32 %v1336_v12, %v1320_v23 }
0x1300   :  { %v1356_v25 = vpop.f32.mrf.mxu0 }
0x1301   :  { %1528 = vtanh.f32 %v1337_v24  ;;  %v1357_v26 = vadd.f32 %v1356_v25, %v1320_v23 }
0x1303   :  { %1530 = vtanh.f32 %v1357_v26 }
0x1306   :  { %v1338_v27 = vpop.f32.mrf.mxu3 }
0x1307   :  { %v1529_v28 = vpop.eup %1528 }
0x1308   :  { %v1358_v29 = vpop.f32.mrf.mxu0  ;;  %1342 = vst.msk [vmem:[#allocation3] sm:$0x1] %vm1341_vm2, %v1529_v28 }
0x1309   :  { %v1531_v30 = vpop.eup %1530 }
0x130a   :  { %1361 = vst.msk [vmem:[#allocation3 + $0x1] sm:$0x1] %vm1341_vm2, %v1531_v30 }
0x130b   :  { %1372 = dma.vmem_to_hbm [thread:$0]  %s1368_s23, 32, %s1370_s24, [#allocation4]  }
0x130c   :  { %1556 = dma.done.wait [#allocation4], 32  }
0x130d   :  { %1557 = vsyncadd [#allocation4], 4294967264 }
0x130e   :  { %1377 = vsyncpa [#allocation4], 1 }

</bundles_post_ra>
